<compile_context>
chip_gen: v5e
topology: v5e:2x2
jax: 0.10.0
libtpu: 0.0.40
codegen_flags: <defaults>
</compile_context>

<pallas_src>
import jax
import jax.numpy as jnp
from jax.experimental import pallas as pl
from jax.experimental.pallas import tpu as pltpu

# ---- static model / problem sizes ----
N_TASKS = 3                      # "angle" regression tasks
IN_FEATS = 30                    # number_atom_features
F_PAD = 32                       # padded feature dim (half a 64-lane group)
HIDDEN = 64                      # graph_conv_layers = [64, 64]
PRED_HIDDEN = 128                # predictor_hidden_feats
LANES = 128                      # lane-dense working width

NODES_PER_GRAPH = 8              # fixed node slots per graph (contiguous, sublane-aligned)
GRAPHS_PER_BLOCK = 16            # whole batch in one grid step (review: fill MXU M dim)
NODES_PER_BLOCK = GRAPHS_PER_BLOCK * NODES_PER_GRAPH   # 128 matmul rows
NUM_GRAPHS = 16
NUM_BLOCKS = NUM_GRAPHS // GRAPHS_PER_BLOCK            # 1 -> grid=(1,)
N_TOTAL = NUM_GRAPHS * NODES_PER_GRAPH                 # 128 nodes total

# ---- packed weight-slab row layout ----
_BD1 = 0          # [128,128] block-diag layer-1 weight: w1 -> lanes 0:64, wr1 -> lanes 64:128
_BD2 = 128        # [128,128] block-diag layer-2 weight: w2 -> lanes 0:64, wr2 -> lanes 64:128
_WP1 = 256        # [128,128] predictor layer-1 weight (rows 0:64 wsum half, 64:128 max half)
_WP2 = 384        # [128,128] predictor layer-2 weight * BN eval scale (cols 0:N_TASKS)
_VEC = 512        # 8 vector rows: bias1, bias2, bp1, bp2, wg_row, bg
WSLAB_ROWS = 520  # multiple of 8


def _softplus(x):
    # numerically-stable softplus (same as torch.nn.functional.softplus)
    return jnp.maximum(x, 0.0) + jnp.log1p(jnp.exp(-jnp.abs(x)))


def _sigmoid(x):
    # stable sigmoid via tanh (EUP op); avoids exp overflow for large |x|
    return 0.5 * (jnp.tanh(0.5 * x) + 1.0)


def gcn_angle_kernel(nd_ref, a_ref, w_ref, proba_ref, out_ref):
    nd = nd_ref[...]                       # [NB,128]: lanes 0:32 x, 32:64 x (dup), 64:128 validity
    a = a_ref[...]                         # [NB,NB] block-diagonal adjacency

    # carve the single packed weight slab with static, tile-aligned slices
    bd1 = w_ref[_BD1:_BD1 + 128, :]
    bd2 = w_ref[_BD2:_BD2 + 128, :]
    wp1 = w_ref[_WP1:_WP1 + 128, :]
    wp2 = w_ref[_WP2:_WP2 + 128, :]
    vec = w_ref[_VEC:_VEC + 8, :]          # [8,128]
    bias1, bias2 = vec[0:1, :], vec[1:2, :]
    bp1, bp2 = vec[2:3, :], vec[3:4, :]
    wg_row = vec[4:5, :]                   # wg in lanes 0:64, zeros elsewhere
    bg = vec[5:6, 0:1]                     # [1,1]

    lane_nb = jax.lax.broadcasted_iota(jnp.int32, (NODES_PER_BLOCK, LANES), 1)

    # ---- GCN layer 1: GraphConv(norm='none')+ReLU and residual Linear+ReLU fused into one
    # MXU launch. Conv path lives in lanes 0:64 of the result, residual path in 64:128.
    agg1 = jnp.dot(a, nd, preferred_element_type=jnp.float32)        # lanes 0:32 == a@x
    lhs1 = jnp.where(lane_nb < F_PAD, agg1, nd)                      # [a@x | x | junk*0-rows]
    h1 = jnp.maximum(jnp.dot(lhs1, bd1, preferred_element_type=jnp.float32) + bias1, 0.0)
    h1d = h1 + pltpu.roll(h1, shift=HIDDEN, axis=1)                  # both halves = layer-1 h

    # ---- GCN layer 2 (same fusion; h1d is already lane-duplicated)
    agg2 = jnp.dot(a, h1d, preferred_element_type=jnp.float32)       # both halves = a@h
    lhs2 = jnp.where(lane_nb < HIDDEN, agg2, h1d)                    # [a@h | h]
    h2 = jnp.maximum(jnp.dot(lhs2, bd2, preferred_element_type=jnp.float32) + bias2, 0.0)
    hd = h2 + pltpu.roll(h2, shift=HIDDEN, axis=1)                   # both halves = node feats h

    # ---- WeightedSumAndMax readout (reshape-based per-graph sublane reductions)
    vcol = nd[:, 2 * F_PAD:2 * F_PAD + 1]                            # [NB,1] node validity (1/0)
    gate = _sigmoid(jnp.sum(hd * wg_row, axis=-1, keepdims=True) + bg)   # [NB,1] (VPU + lane reduce)
    weighted = (gate * vcol) * hd                                    # masked gate*h, [NB,128]
    wsum = jnp.sum(weighted.reshape(GRAPHS_PER_BLOCK, NODES_PER_GRAPH, LANES), axis=1)  # [GB,128]

    neg = jnp.float32(-3.0e38)
    hmasked = jnp.where(vcol > 0.0, hd, neg)
    hmax = jnp.max(hmasked.reshape(GRAPHS_PER_BLOCK, NODES_PER_GRAPH, LANES), axis=1)   # [GB,128]
    # node features are sums of ReLUs (>= 0) -> clamping at 0 is exact for non-empty graphs and
    # reproduces DGL's zero readout for empty graphs.
    hmax = jnp.maximum(hmax, 0.0)

    # ---- MLP predictor: Linear -> ReLU -> BatchNorm1d(eval, folded into wp2) -> Linear
    lane_gb = jax.lax.broadcasted_iota(jnp.int32, (GRAPHS_PER_BLOCK, LANES), 1)
    feat = jnp.where(lane_gb < HIDDEN, wsum, hmax)                   # [wsum | hmax] (halves are dups)
    hpred = jnp.maximum(jnp.dot(feat, wp1, preferred_element_type=jnp.float32) + bp1, 0.0)
    out_pad = jnp.dot(hpred, wp2, preferred_element_type=jnp.float32) + bp2   # [GB,128]

    # ---- regression head on the valid task lanes (padded lanes are exactly 0 pre-mask)
    task = lane_gb < N_TASKS
    sp = jnp.where(task, _softplus(out_pad), 0.0)
    proba_pad = jnp.where(task, sp / jnp.sum(sp, axis=-1, keepdims=True), 0.0)

    proba_ref[...] = proba_pad
    out_ref[...] = out_pad


def gcn_angle_forward(node_slab, adj, wslab):
    grid_spec = pltpu.PrefetchScalarGridSpec(
        num_scalar_prefetch=0,
        grid=(NUM_BLOCKS,),                                            # = (1,) at this batch size
        in_specs=[
            pl.BlockSpec((NODES_PER_BLOCK, LANES), lambda i: (i, 0)),              # node slab
            pl.BlockSpec((NODES_PER_BLOCK, NODES_PER_BLOCK), lambda i: (i, 0)),    # adjacency block
            pl.BlockSpec((WSLAB_ROWS, LANES), lambda i: (0, 0)),                   # packed weights
        ],
        out_specs=(
            pl.BlockSpec((GRAPHS_PER_BLOCK, LANES), lambda i: (i, 0)),
            pl.BlockSpec((GRAPHS_PER_BLOCK, LANES), lambda i: (i, 0)),
        ),
    )
    out_shape = (jax.ShapeDtypeStruct((NUM_GRAPHS, LANES), jnp.float32),
                 jax.ShapeDtypeStruct((NUM_GRAPHS, LANES), jnp.float32))
    fn = pl.pallas_call(
        gcn_angle_kernel,
        out_shape=out_shape,
        grid_spec=grid_spec,
        compiler_params=pltpu.CompilerParams(
            dimension_semantics=("arbitrary",),   # single grid step; no megacore split needed
        ),
    )
    proba_pad, out_pad = fn(node_slab, adj, wslab)
    return proba_pad[:, :N_TASKS], out_pad[:, :N_TASKS]


# ---- host-side parameter packing: ONE [520,128] weight slab (single DMA) ----
def pack_params(params):
    (w1, b1, wr1, br1, w2, b2, wr2, br2, wg, bg, wp1, bp1, wp2, bp2) = params
    bn_scale = (1.0 + 1e-5) ** -0.5                 # BN eval with default running stats
    W = jnp.zeros((WSLAB_ROWS, LANES), jnp.float32)
    # fused GCN layer 1: block-diag [w1 -> lanes 0:64 ; wr1 -> lanes 64:128]
    W = W.at[_BD1 + 0:_BD1 + IN_FEATS, 0:HIDDEN].set(w1)
    W = W.at[_BD1 + F_PAD:_BD1 + F_PAD + IN_FEATS, HIDDEN:2 * HIDDEN].set(wr1)
    # fused GCN layer 2
    W = W.at[_BD2 + 0:_BD2 + HIDDEN, 0:HIDDEN].set(w2)
    W = W.at[_BD2 + HIDDEN:_BD2 + 2 * HIDDEN, HIDDEN:2 * HIDDEN].set(wr2)
    # predictor weights (BN scale folded into wp2)
    W = W.at[_WP1:_WP1 + 2 * HIDDEN, 0:PRED_HIDDEN].set(wp1)
    W = W.at[_WP2:_WP2 + PRED_HIDDEN, 0:N_TASKS].set(wp2 * bn_scale)
    # vector rows
    W = W.at[_VEC + 0, 0:HIDDEN].set(b1[0])
    W = W.at[_VEC + 0, HIDDEN:2 * HIDDEN].set(br1[0])
    W = W.at[_VEC + 1, 0:HIDDEN].set(b2[0])
    W = W.at[_VEC + 1, HIDDEN:2 * HIDDEN].set(br2[0])
    W = W.at[_VEC + 2, 0:PRED_HIDDEN].set(bp1[0])
    W = W.at[_VEC + 3, 0:N_TASKS].set(bp2[0])
    W = W.at[_VEC + 4, 0:HIDDEN].set(wg[:, 0])
    W = W.at[_VEC + 5, 0].set(bg[0, 0])
    return W


# ---- pure-JAX reference of the ORIGINAL (unpacked) math, for correctness ----
def gcn_angle_ref(x, a_full, mem_full, params):
    (w1, b1, wr1, br1, w2, b2, wr2, br2, wg, bg, wp1, bp1, wp2, bp2) = params
    h = jnp.maximum(a_full @ x @ w1 + b1, 0.0) + jnp.maximum(x @ wr1 + br1, 0.0)
    h = jnp.maximum(a_full @ h @ w2 + b2, 0.0) + jnp.maximum(h @ wr2 + br2, 0.0)
    gate = _sigmoid(h @ wg + bg)
    wsum = mem_full @ (gate * h)
    hmax = jnp.max(jnp.where(mem_full[:, :, None] > 0, h[None, :, :], -3.0e38), axis=1)
    g_feat = jnp.concatenate([wsum, hmax], axis=1)
    h1 = jnp.maximum(g_feat @ wp1 + bp1, 0.0) / jnp.sqrt(1.0 + 1e-5)
    out = h1 @ wp2 + bp2
    sp = _softplus(out)
    return sp / jnp.sum(sp, axis=-1, keepdims=True), out


def init_params(key):
    ks = jax.random.split(key, 14)

    def w(k, shape, scale=0.1):
        return (scale * jax.random.normal(k, shape)).astype(jnp.float32)

    return [
        w(ks[0], (IN_FEATS, HIDDEN)), w(ks[1], (1, HIDDEN)),               # GraphConv 1
        w(ks[2], (IN_FEATS, HIDDEN)), w(ks[3], (1, HIDDEN)),               # residual 1
        w(ks[4], (HIDDEN, HIDDEN)), w(ks[5], (1, HIDDEN)),                 # GraphConv 2
        w(ks[6], (HIDDEN, HIDDEN)), w(ks[7], (1, HIDDEN)),                 # residual 2
        w(ks[8], (HIDDEN, 1)), w(ks[9], (1, 1)),                           # gate (atom weighting)
        w(ks[10], (2 * HIDDEN, PRED_HIDDEN)), w(ks[11], (1, PRED_HIDDEN)), # MLP layer 1
        w(ks[12], (PRED_HIDDEN, N_TASKS)), w(ks[13], (1, N_TASKS)),        # MLP layer 2
    ]


if __name__ == "__main__":
    key = jax.random.PRNGKey(0)
    kx, ka, kp = jax.random.split(key, 3)

    # node features for all node slots (invalid slots carry features but are masked at readout)
    x_raw = jax.random.normal(kx, (N_TOTAL, IN_FEATS), dtype=jnp.float32)

    # per-graph symmetric adjacency with self-loops; variable node counts exercise masking
    a_full = jnp.zeros((N_TOTAL, N_TOTAL), jnp.float32)        # also the kernel's block-diag block
    mem_full = jnp.zeros((NUM_GRAPHS, N_TOTAL), jnp.float32)   # reference membership
    node_valid = jnp.zeros((N_TOTAL,), jnp.float32)
    for g in range(NUM_GRAPHS):
        n_g = NODES_PER_GRAPH - (g % 3)                        # 8 / 7 / 6 nodes
        s = g * NODES_PER_GRAPH
        kg = jax.random.fold_in(ka, g)
        bern = jax.random.bernoulli(kg, 0.3, (n_g, n_g)).astype(jnp.float32)
        sym = jnp.maximum(bern, bern.T)
        adj_g = jnp.maximum(sym, jnp.eye(n_g, dtype=jnp.float32))
        a_full = a_full.at[s:s + n_g, s:s + n_g].set(adj_g)
        mem_full = mem_full.at[g, s:s + n_g].set(1.0)
        node_valid = node_valid.at[s:s + n_g].set(1.0)

    # kernel node slab: lanes 0:32 = x, 32:64 = x (duplicate for the fused layer-1 matmul),
    # lanes 64:128 = node validity
    node_slab = jnp.zeros((N_TOTAL, LANES), jnp.float32)
    node_slab = node_slab.at[:, :IN_FEATS].set(x_raw)
    node_slab = node_slab.at[:, F_PAD:F_PAD + IN_FEATS].set(x_raw)
    node_slab = node_slab.at[:, 2 * F_PAD:].set(node_valid[:, None])

    params = init_params(kp)
    wslab = pack_params(params)

    proba, out = gcn_angle_forward(node_slab, a_full, wslab)
    jax.block_until_ready((proba, out))

    proba_ref, out_ref = gcn_angle_ref(x_raw, a_full, mem_full, params)
    assert proba.shape == (NUM_GRAPHS, N_TASKS) and out.shape == (NUM_GRAPHS, N_TASKS)
    assert jnp.allclose(proba, proba_ref, atol=1e-4, rtol=1e-3), \
        float(jnp.max(jnp.abs(proba - proba_ref)))
    assert jnp.allclose(out, out_ref, atol=1e-3, rtol=1e-3), \
        float(jnp.max(jnp.abs(out - out_ref)))

    print("KERNEL_OK")
</pallas_src>

<mosaic_0001>
module attributes {stable_mosaic.version = 11 : i64} {
  func.func @gcn_angle_kernel(%arg0: i32, %arg1: memref<128x128xf32, #tpu.memory_space<vmem>>, %arg2: memref<128x128xf32, #tpu.memory_space<vmem>>, %arg3: memref<520x128xf32, #tpu.memory_space<vmem>>, %arg4: memref<16x128xf32, #tpu.memory_space<vmem>>, %arg5: memref<16x128xf32, #tpu.memory_space<vmem>>) attributes {dimension_semantics = [#tpu.dimension_semantics<arbitrary>], iteration_bounds = array<i64: 1>, scalar_prefetch = 0 : i64, scratch_operands = 0 : i64, tpu.core_type = #tpu.core_type<tc>, window_params = [{transform_indices = @transform_0, window_bounds = array<i64: 128, 128>}, {transform_indices = @transform_1, window_bounds = array<i64: 128, 128>}, {pipeline_mode = #tpu.pipeline_mode<synchronous>, transform_indices = @transform_2, window_bounds = array<i64: 520, 128>}, {transform_indices = @transform_3, window_bounds = array<i64: 16, 128>}, {transform_indices = @transform_4, window_bounds = array<i64: 16, 128>}]} {
    %c0 = arith.constant 0 : index
    %c0_0 = arith.constant 0 : index
    %0 = vector.load %arg1[%c0, %c0_0] : memref<128x128xf32, #tpu.memory_space<vmem>>, vector<128x128xf32>
    %c0_1 = arith.constant 0 : index
    %c0_2 = arith.constant 0 : index
    %1 = vector.load %arg2[%c0_1, %c0_2] : memref<128x128xf32, #tpu.memory_space<vmem>>, vector<128x128xf32>
    %c0_3 = arith.constant 0 : index
    %c0_4 = arith.constant 0 : index
    %2 = vector.load %arg3[%c0_3, %c0_4] : memref<520x128xf32, #tpu.memory_space<vmem>>, vector<128x128xf32>
    %c128 = arith.constant 128 : index
    %c0_5 = arith.constant 0 : index
    %3 = vector.load %arg3[%c128, %c0_5] : memref<520x128xf32, #tpu.memory_space<vmem>>, vector<128x128xf32>
    %c256 = arith.constant 256 : index
    %c0_6 = arith.constant 0 : index
    %4 = vector.load %arg3[%c256, %c0_6] : memref<520x128xf32, #tpu.memory_space<vmem>>, vector<128x128xf32>
    %c384 = arith.constant 384 : index
    %c0_7 = arith.constant 0 : index
    %5 = vector.load %arg3[%c384, %c0_7] : memref<520x128xf32, #tpu.memory_space<vmem>>, vector<128x128xf32>
    %c512 = arith.constant 512 : index
    %c0_8 = arith.constant 0 : index
    %6 = vector.load %arg3[%c512, %c0_8] : memref<520x128xf32, #tpu.memory_space<vmem>>, vector<8x128xf32>
    %7 = vector.extract_strided_slice %6 {offsets = [0, 0], sizes = [1, 128], strides = [1, 1]} : vector<8x128xf32> to vector<1x128xf32>
    %8 = vector.extract_strided_slice %6 {offsets = [1, 0], sizes = [1, 128], strides = [1, 1]} : vector<8x128xf32> to vector<1x128xf32>
    %9 = vector.extract_strided_slice %6 {offsets = [2, 0], sizes = [1, 128], strides = [1, 1]} : vector<8x128xf32> to vector<1x128xf32>
    %10 = vector.extract_strided_slice %6 {offsets = [3, 0], sizes = [1, 128], strides = [1, 1]} : vector<8x128xf32> to vector<1x128xf32>
    %11 = vector.extract_strided_slice %6 {offsets = [4, 0], sizes = [1, 128], strides = [1, 1]} : vector<8x128xf32> to vector<1x128xf32>
    %12 = vector.extract_strided_slice %6 {offsets = [5, 0], sizes = [1, 1], strides = [1, 1]} : vector<8x128xf32> to vector<1x1xf32>
    %13 = tpu.iota {dimensions = array<i32: 1>} : vector<128x128xi32>
    %cst = arith.constant dense<0.000000e+00> : vector<128x128xf32>
    %14 = tpu.matmul %1, %0, %cst {dimension_numbers = #tpu.dot_dimension_numbers<[1], [0], [0], [1], [0, 0, 1, 1], [], []>} : vector<128x128xf32>, vector<128x128xf32>, vector<128x128xf32> -> vector<128x128xf32>
    %c32_i32 = arith.constant 32 : i32
    %15 = vector.broadcast %c32_i32 : i32 to vector<128x128xi32>
    %16 = arith.cmpi slt, %13, %15 : vector<128x128xi32>
    %17 = arith.select %16, %14, %0 : vector<128x128xi1>, vector<128x128xf32>
    %cst_9 = arith.constant dense<0.000000e+00> : vector<128x128xf32>
    %18 = tpu.matmul %17, %2, %cst_9 {dimension_numbers = #tpu.dot_dimension_numbers<[1], [0], [0], [1], [0, 0, 1, 1], [], []>} : vector<128x128xf32>, vector<128x128xf32>, vector<128x128xf32> -> vector<128x128xf32>
    %19 = vector.broadcast %7 : vector<1x128xf32> to vector<128x128xf32>
    %20 = arith.addf %18, %19 : vector<128x128xf32>
    %cst_10 = arith.constant 0.000000e+00 : f32
    %21 = vector.broadcast %cst_10 : f32 to vector<128x128xf32>
    %22 = arith.maximumf %20, %21 : vector<128x128xf32>
    %c64_i32 = arith.constant 64 : i32
    %23 = tpu.dynamic_rotate %22 by %c64_i32 dim 1 : vector<128x128xf32>, i32 -> vector<128x128xf32>
    %24 = arith.addf %22, %23 : vector<128x128xf32>
    %cst_11 = arith.constant dense<0.000000e+00> : vector<128x128xf32>
    %25 = tpu.matmul %1, %24, %cst_11 {dimension_numbers = #tpu.dot_dimension_numbers<[1], [0], [0], [1], [0, 0, 1, 1], [], []>} : vector<128x128xf32>, vector<128x128xf32>, vector<128x128xf32> -> vector<128x128xf32>
    %c64_i32_12 = arith.constant 64 : i32
    %26 = vector.broadcast %c64_i32_12 : i32 to vector<128x128xi32>
    %27 = arith.cmpi slt, %13, %26 : vector<128x128xi32>
    %28 = arith.select %27, %25, %24 : vector<128x128xi1>, vector<128x128xf32>
    %cst_13 = arith.constant dense<0.000000e+00> : vector<128x128xf32>
    %29 = tpu.matmul %28, %3, %cst_13 {dimension_numbers = #tpu.dot_dimension_numbers<[1], [0], [0], [1], [0, 0, 1, 1], [], []>} : vector<128x128xf32>, vector<128x128xf32>, vector<128x128xf32> -> vector<128x128xf32>
    %30 = vector.broadcast %8 : vector<1x128xf32> to vector<128x128xf32>
    %31 = arith.addf %29, %30 : vector<128x128xf32>
    %cst_14 = arith.constant 0.000000e+00 : f32
    %32 = vector.broadcast %cst_14 : f32 to vector<128x128xf32>
    %33 = arith.maximumf %31, %32 : vector<128x128xf32>
    %c64_i32_15 = arith.constant 64 : i32
    %34 = tpu.dynamic_rotate %33 by %c64_i32_15 dim 1 : vector<128x128xf32>, i32 -> vector<128x128xf32>
    %35 = arith.addf %33, %34 : vector<128x128xf32>
    %36 = vector.extract_strided_slice %0 {offsets = [0, 64], sizes = [128, 1], strides = [1, 1]} : vector<128x128xf32> to vector<128x1xf32>
    %37 = vector.broadcast %11 : vector<1x128xf32> to vector<128x128xf32>
    %38 = arith.mulf %35, %37 : vector<128x128xf32>
    %cst_16 = arith.constant dense<0.000000e+00> : vector<128xf32>
    %39 = vector.multi_reduction <add>, %38, %cst_16 [1] : vector<128x128xf32> to vector<128xf32>
    %40 = vector.shape_cast %39 : vector<128xf32> to vector<128x1xf32>
    %41 = vector.broadcast %12 : vector<1x1xf32> to vector<128x1xf32>
    %42 = arith.addf %40, %41 : vector<128x1xf32>
    %cst_17 = arith.constant 5.000000e-01 : f32
    %43 = vector.broadcast %cst_17 : f32 to vector<128x1xf32>
    %44 = arith.mulf %43, %42 : vector<128x1xf32>
    %45 = math.tanh %44 : vector<128x1xf32>
    %cst_18 = arith.constant 1.000000e+00 : f32
    %46 = vector.broadcast %cst_18 : f32 to vector<128x1xf32>
    %47 = arith.addf %45, %46 : vector<128x1xf32>
    %cst_19 = arith.constant 5.000000e-01 : f32
    %48 = vector.broadcast %cst_19 : f32 to vector<128x1xf32>
    %49 = arith.mulf %48, %47 : vector<128x1xf32>
    %50 = arith.mulf %49, %36 : vector<128x1xf32>
    %51 = vector.broadcast %50 : vector<128x1xf32> to vector<128x128xf32>
    %52 = arith.mulf %51, %35 : vector<128x128xf32>
    %53 = vector.shape_cast %52 : vector<128x128xf32> to vector<16x8x128xf32>
    %cst_20 = arith.constant dense<0.000000e+00> : vector<16x128xf32>
    %54 = vector.multi_reduction <add>, %53, %cst_20 [1] : vector<16x8x128xf32> to vector<16x128xf32>
    %cst_21 = arith.constant 0.000000e+00 : f32
    %55 = vector.broadcast %cst_21 : f32 to vector<128x1xf32>
    %56 = arith.cmpf ogt, %36, %55 : vector<128x1xf32>
    %cst_22 = arith.constant -3.000000e+38 : f32
    %57 = vector.shape_cast %56 : vector<128x1xi1> to vector<128x1xi1>
    %58 = vector.broadcast %57 : vector<128x1xi1> to vector<128x128xi1>
    %59 = vector.broadcast %cst_22 : f32 to vector<128x128xf32>
    %60 = arith.select %58, %35, %59 : vector<128x128xi1>, vector<128x128xf32>
    %61 = vector.shape_cast %60 : vector<128x128xf32> to vector<16x8x128xf32>
    %cst_23 = arith.constant dense<0xFF800000> : vector<16x128xf32>
    %62 = vector.multi_reduction <maximumf>, %61, %cst_23 [1] : vector<16x8x128xf32> to vector<16x128xf32>
    %cst_24 = arith.constant 0.000000e+00 : f32
    %63 = vector.broadcast %cst_24 : f32 to vector<16x128xf32>
    %64 = arith.maximumf %62, %63 : vector<16x128xf32>
    %65 = tpu.iota {dimensions = array<i32: 1>} : vector<16x128xi32>
    %c64_i32_25 = arith.constant 64 : i32
    %66 = vector.broadcast %c64_i32_25 : i32 to vector<16x128xi32>
    %67 = arith.cmpi slt, %65, %66 : vector<16x128xi32>
    %68 = arith.select %67, %54, %64 : vector<16x128xi1>, vector<16x128xf32>
    %cst_26 = arith.constant dense<0.000000e+00> : vector<16x128xf32>
    %69 = tpu.matmul %68, %4, %cst_26 {dimension_numbers = #tpu.dot_dimension_numbers<[1], [0], [0], [1], [0, 0, 1, 1], [], []>} : vector<16x128xf32>, vector<128x128xf32>, vector<16x128xf32> -> vector<16x128xf32>
    %70 = vector.broadcast %9 : vector<1x128xf32> to vector<16x128xf32>
    %71 = arith.addf %69, %70 : vector<16x128xf32>
    %cst_27 = arith.constant 0.000000e+00 : f32
    %72 = vector.broadcast %cst_27 : f32 to vector<16x128xf32>
    %73 = arith.maximumf %71, %72 : vector<16x128xf32>
    %cst_28 = arith.constant dense<0.000000e+00> : vector<16x128xf32>
    %74 = tpu.matmul %73, %5, %cst_28 {dimension_numbers = #tpu.dot_dimension_numbers<[1], [0], [0], [1], [0, 0, 1, 1], [], []>} : vector<16x128xf32>, vector<128x128xf32>, vector<16x128xf32> -> vector<16x128xf32>
    %75 = vector.broadcast %10 : vector<1x128xf32> to vector<16x128xf32>
    %76 = arith.addf %74, %75 : vector<16x128xf32>
    %c3_i32 = arith.constant 3 : i32
    %77 = vector.broadcast %c3_i32 : i32 to vector<16x128xi32>
    %78 = arith.cmpi slt, %65, %77 : vector<16x128xi32>
    %cst_29 = arith.constant 0.000000e+00 : f32
    %79 = vector.broadcast %cst_29 : f32 to vector<16x128xf32>
    %80 = arith.maximumf %76, %79 : vector<16x128xf32>
    %81 = math.absf %76 : vector<16x128xf32>
    %cst_30 = arith.constant 0.000000e+00 : f32
    %82 = vector.broadcast %cst_30 : f32 to vector<16x128xf32>
    %83 = arith.subf %82, %81 : vector<16x128xf32>
    %84 = math.exp %83 : vector<16x128xf32>
    %85 = math.log1p %84 : vector<16x128xf32>
    %86 = arith.addf %80, %85 : vector<16x128xf32>
    %cst_31 = arith.constant 0.000000e+00 : f32
    %87 = vector.broadcast %cst_31 : f32 to vector<16x128xf32>
    %88 = arith.select %78, %86, %87 : vector<16x128xi1>, vector<16x128xf32>
    %cst_32 = arith.constant dense<0.000000e+00> : vector<16xf32>
    %89 = vector.multi_reduction <add>, %88, %cst_32 [1] : vector<16x128xf32> to vector<16xf32>
    %90 = vector.shape_cast %89 : vector<16xf32> to vector<16x1xf32>
    %91 = vector.broadcast %90 : vector<16x1xf32> to vector<16x128xf32>
    %92 = arith.divf %88, %91 : vector<16x128xf32>
    %cst_33 = arith.constant 0.000000e+00 : f32
    %93 = vector.broadcast %cst_33 : f32 to vector<16x128xf32>
    %94 = arith.select %78, %92, %93 : vector<16x128xi1>, vector<16x128xf32>
    %c0_34 = arith.constant 0 : index
    %c0_35 = arith.constant 0 : index
    %95 = vector.load %arg4[%c0_34, %c0_35] : memref<16x128xf32, #tpu.memory_space<vmem>>, vector<16x128xf32>
    tpu.vector_store %arg4[%c0_34, %c0_35], %94 {strides = array<i32>} : memref<16x128xf32, #tpu.memory_space<vmem>>, vector<16x128xf32>,
    %c0_36 = arith.constant 0 : index
    %c0_37 = arith.constant 0 : index
    %96 = vector.load %arg5[%c0_36, %c0_37] : memref<16x128xf32, #tpu.memory_space<vmem>>, vector<16x128xf32>
    tpu.vector_store %arg5[%c0_36, %c0_37], %76 {strides = array<i32>} : memref<16x128xf32, #tpu.memory_space<vmem>>, vector<16x128xf32>,
    return
  }
  func.func @transform_0(%arg0: i32) -> (i32, i32) {
    %c0_i32 = arith.constant 0 : i32
    %c0_i32_0 = arith.constant 0 : i32
    return %arg0, %c0_i32 : i32, i32
  }
  func.func @transform_1(%arg0: i32) -> (i32, i32) {
    %c0_i32 = arith.constant 0 : i32
    %c0_i32_0 = arith.constant 0 : i32
    return %arg0, %c0_i32 : i32, i32
  }
  func.func @transform_2(%arg0: i32) -> (i32, i32) {
    %c0_i32 = arith.constant 0 : i32
    %c0_i32_0 = arith.constant 0 : i32
    %c0_i32_1 = arith.constant 0 : i32
    return %c0_i32, %c0_i32_0 : i32, i32
  }
  func.func @transform_3(%arg0: i32) -> (i32, i32) {
    %c0_i32 = arith.constant 0 : i32
    %c0_i32_0 = arith.constant 0 : i32
    return %arg0, %c0_i32 : i32, i32
  }
  func.func @transform_4(%arg0: i32) -> (i32, i32) {
    %c0_i32 = arith.constant 0 : i32
    %c0_i32_0 = arith.constant 0 : i32
    return %arg0, %c0_i32 : i32, i32
  }
}

</mosaic_0001>

<bundles_post_ra>
// kernel: tpu_custom_call.1
= control target key start
LH: loop header
LB: loop body
LE: loop exit
PB: predicated region body
PF: predicated region fallthrough
CT: control target
= control target key end

     0   :  { %10 = vsyncpa [#allocation3], 0  ;;  %s2556_s0 = inlined_call_operand.hbm [shape: f32[128,128], index: 0, kind: input, shape index: {}]   ;;  %s2557_s1 = inlined_call_operand.hbm [shape: f32[128,128], index: 1, kind: input, shape index: {}]   ;;  %s2558_s2 = inlined_call_operand.hbm [shape: f32[520,128], index: 2, kind: input, shape index: {}]   ;;  %s2559_s3 = inlined_call_operand.hbm [shape: f32[16,128], index: 3, kind: output, shape index: {0}]   ;;  %s2560_s4 = inlined_call_operand.hbm [shape: f32[16,128], index: 4, kind: output, shape index: {1}]  }
   0x1   :  { %11 = vsyncpa [#allocation6], 0 }
   0x2   :  { %12 = vsyncpa [#allocation4], 0 }
   0x3   :  { %13 = vsyncpa [#allocation10], 0  ;;  %s31_s17 = sshll.u32 %s2557_s1, 4  ;;  %s1675_s18 = smov [#allocation5]   ;;  %s32_s17 = int_to_ptr.hbm [resolvable:$true] %s31_s17 }
   0x4   :  { %s33_s19 = sshll.u32 %s1675_s18, 4  ;;  %s18_s22 = sshll.u32 %s2556_s0, 4  ;;  %s34_s19 = int_to_ptr.vmem [resolvable:$true] %s33_s19  ;;  %s19_s22 = int_to_ptr.hbm [resolvable:$true] %s18_s22 }
   0x5   :  { %s1676_s23 = smov 128   ;;  %s1677_s24 = smov 8  }
   0x6   :  { %39 = dma.hbm_to_vmem [thread:$0]  %s32_s17, 2048, %s34_s19, [#allocation6], %s1676_s23, %s1676_s23, %s1677_s24  }
   0x7   :  { %s1678_s25 = smov [#allocation2]   ;;  %s44_s1 = sshll.u32 %s2558_s2, 4  ;;  %s45_s1 = int_to_ptr.hbm [resolvable:$true] %s44_s1 }
   0x8   :  { %s20_s26 = sshll.u32 %s1678_s25, 4  ;;  %s1679_s0 = smov [#allocation7]   ;;  %s21_s26 = int_to_ptr.vmem [resolvable:$true] %s20_s26 }
   0x9   :  { %26 = dma.hbm_to_vmem [thread:$0]  %s19_s22, 2048, %s21_s26, [#allocation3], %s1676_s23, %s1676_s23, %s1677_s24  }
   0xa   :  { %s46_s29 = sshll.u32 %s1679_s0, 4  ;;  %s47_s29 = int_to_ptr.vmem [resolvable:$true] %s46_s29 }
   0xb   :  { %52 = dma.hbm_to_vmem [thread:$0]  %s45_s1, 8320, %s47_s29, [#allocation6], %s1676_s23, %s1676_s23, %s1677_s24  }
   0xc   :  { %1667 = dma.done.wait [#allocation3], 2048  }
   0xd   :  { %1668 = vsyncadd [#allocation3], 4294965248 }
   0xe   :  { %1669 = dma.done.wait [#allocation6], 10368  }
   0xf   :  { %1670 = vsyncadd [#allocation6], 4294956928  ;;  %v1728_v0 = vld [vmem:[#allocation2 + $0x78] sm:$0xff]  ;;  %v1730_v1 = vld [vmem:[#allocation2 + $0x70] sm:$0xff]  ;;  %v162_v47 = vlaneseq  ;;  %s1680_s2 = smov 64   ;;  %s1683_s30 = smov [#allocation9]  }
  0x10   :  { %164 = vmatpush.msra.mxu0 %v1728_v0  ;;  %v1733_v2 = vld [vmem:[#allocation2 + $0x68] sm:$0xff]  ;;  %v1736_v3 = vld [vmem:[#allocation2 + $0x60] sm:$0xff]  ;;  %v1739_v4 = vld [vmem:[#allocation2 + $0x58] sm:$0xff]  ;;  %vm1004_vm5 = vcmp.gt.f32.partialorder %v1730_v1, 0.0  ;;  %vm1005_vm8 = vcmp.gt.f32.partialorder %v1728_v0, 0.0  ;;  %s1427_s5 = sshll.u32 %s1683_s30, 4  ;;  %s1428_s5 = int_to_ptr.vmem [resolvable:$true] %s1427_s5 }
  0x11   :  { %v1742_v5 = vld [vmem:[#allocation2 + $0x50] sm:$0xff]  ;;  %v1745_v6 = vld [vmem:[#allocation2 + $0x48] sm:$0xff]  ;;  %v1748_v7 = vld [vmem:[#allocation2 + $0x40] sm:$0xff]  ;;  %v1823_v49 = vand.u32 127, %v162_v47  ;;  %vm1001_vm3 = vcmp.gt.f32.partialorder %v1739_v4, 0.0  ;;  %vm1002_vm7 = vcmp.gt.f32.partialorder %v1736_v3, 0.0 }
  0x12   :  { %165 = vmatpush.msra.mxu0 %v1730_v1  ;;  %v1751_v8 = vld [vmem:[#allocation2 + $0x38] sm:$0xff]  ;;  %v1754_v9 = vld [vmem:[#allocation2 + $0x30] sm:$0xff]  ;;  %v1757_v10 = vld [vmem:[#allocation2 + $0x28] sm:$0xff]  ;;  %vm998_vm2 = vcmp.gt.f32.partialorder %v1748_v7, 0.0  ;;  %vm1000_vm4 = vcmp.gt.f32.partialorder %v1742_v5, 0.0  ;;  %vm999_vm6 = vcmp.gt.f32.partialorder %v1745_v6, 0.0 }
  0x13   :  { %v1760_v11 = vld [vmem:[#allocation2 + $0x20] sm:$0xff]  ;;  %v1763_v12 = vld [vmem:[#allocation2 + $0x18] sm:$0xff]  ;;  %v1766_v13 = vld [vmem:[#allocation2 + $0x10] sm:$0xff]  ;;  %vm229_vm0 = vcmp.lt.s32.totalorder %v1823_v49, 32  ;;  %vm441_vm1 = vcmp.lt.s32.totalorder %v1823_v49, 64  ;;  %vm1003_vm9 = vcmp.gt.f32.partialorder %v1733_v2, 0.0 }
  0x14   :  { %166 = vmatpush.msra.mxu0 %v1733_v2  ;;  %v1769_v14 = vld [vmem:[#allocation2 + $0x8] sm:$0xff]  ;;  %v1772_v15 = vld [vmem:[#allocation2] sm:$0xff]  ;;  %v1782_v18 = vld [vmem:[#allocation5 + $0x10] sm:$0xff]  ;;  %vm992_vm10 = vcmp.gt.f32.partialorder %v1766_v13, 0.0  ;;  %vm993_vm13 = vcmp.gt.f32.partialorder %v1763_v12, 0.0  ;;  %s1429_s8 = sshll.u32 %s2560_s4, 4  ;;  %s1430_s8 = int_to_ptr.hbm [resolvable:$true] %s1429_s8 }
  0x15   :  { %v1775_v16 = vld [vmem:[#allocation5] sm:$0xff]  ;;  %v1779_v17 = vld [vmem:[#allocation5 + $0x8] sm:$0xff]  ;;  %v1785_v19 = vld [vmem:[#allocation5 + $0x18] sm:$0xff]  ;;  %vm990_vm11 = vcmp.gt.f32.partialorder %v1772_v15, 0.0  ;;  %vm991_vm12 = vcmp.gt.f32.partialorder %v1769_v14, 0.0  ;;  %s1684_s4 = smov [#allocation8]  }
  0x16   :  { %167 = vmatpush.msra.mxu0 %v1736_v3  ;;  %v1788_v20 = vld [vmem:[#allocation5 + $0x20] sm:$0xff]  ;;  %v1791_v21 = vld [vmem:[#allocation5 + $0x28] sm:$0xff]  ;;  %v1794_v22 = vld [vmem:[#allocation5 + $0x30] sm:$0xff]  ;;  %s1414_s9 = sshll.u32 %s1684_s4, 4  ;;  %s1416_s12 = sshll.u32 %s2559_s3, 4  ;;  %s1415_s9 = int_to_ptr.vmem [resolvable:$true] %s1414_s9  ;;  %s1417_s12 = int_to_ptr.hbm [resolvable:$true] %s1416_s12 }
  0x17   :  { %v1797_v23 = vld [vmem:[#allocation5 + $0x38] sm:$0xff]  ;;  %v1800_v24 = vld [vmem:[#allocation5 + $0x40] sm:$0xff]  ;;  %v111_v26 = vld [vmem:[#allocation7 + $0x70] sm:$0xff] }
  0x18   :  { %168 = vmatpush.msra.mxu0 %v1739_v4  ;;  %v112_v25 = vld [vmem:[#allocation7 + $0x78] sm:$0xff]  ;;  %v110_v27 = vld [vmem:[#allocation7 + $0x68] sm:$0xff]  ;;  %v109_v28 = vld [vmem:[#allocation7 + $0x60] sm:$0xff] }
  0x19   :  { %247 = vmatpush.msra.mxu1 %v112_v25  ;;  %v1803_v29 = vld [vmem:[#allocation5 + $0x48] sm:$0xff]  ;;  %v108_v30 = vld [vmem:[#allocation7 + $0x58] sm:$0xff]  ;;  %v107_v31 = vld [vmem:[#allocation7 + $0x50] sm:$0xff] }
  0x1a   :  { %169 = vmatpush.msra.mxu0 %v1742_v5  ;;  %v106_v32 = vld [vmem:[#allocation7 + $0x48] sm:$0xff]  ;;  %v105_v33 = vld [vmem:[#allocation7 + $0x40] sm:$0xff]  ;;  %v1806_v34 = vld [vmem:[#allocation5 + $0x50] sm:$0xff] }
  0x1b   :  { %248 = vmatpush.msra.mxu1 %v111_v26  ;;  %v104_v35 = vld [vmem:[#allocation7 + $0x38] sm:$0xff]  ;;  %v103_v36 = vld [vmem:[#allocation7 + $0x30] sm:$0xff]  ;;  %v102_v37 = vld [vmem:[#allocation7 + $0x28] sm:$0xff] }
  0x1c   :  { %170 = vmatpush.msra.mxu0 %v1745_v6  ;;  %v101_v38 = vld [vmem:[#allocation7 + $0x20] sm:$0xff]  ;;  %v1809_v39 = vld [vmem:[#allocation5 + $0x58] sm:$0xff]  ;;  %v99_v41 = vld [vmem:[#allocation7 + $0x10] sm:$0xff] }
  0x1d   :  { %249 = vmatpush.msra.mxu1 %v110_v27  ;;  %v100_v40 = vld [vmem:[#allocation7 + $0x18] sm:$0xff]  ;;  %v98_v42 = vld [vmem:[#allocation7 + $0x8] sm:$0xff]  ;;  %v1812_v43 = vld [vmem:[#allocation5 + $0x60] sm:$0xff] }
  0x1e   :  { %171 = vmatpush.msra.mxu0 %v1748_v7  ;;  %v97_v44 = vld [vmem:[#allocation7] sm:$0xff]  ;;  %v1815_v45 = vld [vmem:[#allocation5 + $0x68] sm:$0xff]  ;;  %v1818_v46 = vld [vmem:[#allocation5 + $0x70] sm:$0xff] }
  0x1f   :  { %250 = vmatpush.msra.mxu1 %v109_v28  ;;  %v1821_v48 = vld [vmem:[#allocation5 + $0x78] sm:$0xff] }
  0x20   :  { %172 = vmatpush.msra.mxu0 %v1751_v8 }
  0x21   :  { %251 = vmatpush.msra.mxu1 %v108_v30 }
  0x22   :  { %173 = vmatpush.msra.mxu0 %v1754_v9 }
  0x23   :  { %252 = vmatpush.msra.mxu1 %v107_v31 }
  0x24   :  { %174 = vmatpush.msra.mxu0 %v1757_v10 }
  0x25   :  { %253 = vmatpush.msra.mxu1 %v106_v32 }
  0x26   :  { %175 = vmatpush.msra.mxu0 %v1760_v11 }
  0x27   :  { %254 = vmatpush.msra.mxu1 %v105_v33 }
  0x28   :  { %176 = vmatpush.msra.mxu0 %v1763_v12 }
  0x29   :  { %255 = vmatpush.msra.mxu1 %v104_v35 }
  0x2a   :  { %177 = vmatpush.msra.mxu0 %v1766_v13 }
  0x2b   :  { %256 = vmatpush.msra.mxu1 %v103_v36 }
  0x2c   :  { %178 = vmatpush.msra.mxu0 %v1769_v14 }
  0x2d   :  { %257 = vmatpush.msra.mxu1 %v102_v37 }
  0x2e   :  { %179 = vmatpush.msra.mxu0 %v1772_v15 }
  0x2f   :  { %180 = vmatmul.f32.vlgmr.msra.gmra.mxu0 %v1775_v16  ;;  %258 = vmatpush.msra.mxu1 %v101_v38 }
  0x31   :  { %259 = vmatpush.msra.mxu1 %v100_v40 }
  0x33   :  { %260 = vmatpush.msra.mxu1 %v99_v41 }
  0x35   :  { %261 = vmatpush.msra.mxu1 %v98_v42 }
  0x37   :  { %183 = vmatmul.f32.gmra.mxu0 %v1779_v17  ;;  %262 = vmatpush.msra.mxu1 %v97_v44 }
  0x3f   :  { %186 = vmatmul.f32.gmra.mxu0 %v1782_v18 }
  0x47   :  { %189 = vmatmul.f32.gmra.mxu0 %v1785_v19 }
  0x4f   :  { %192 = vmatmul.f32.gmra.mxu0 %v1788_v20 }
  0x57   :  { %195 = vmatmul.f32.gmra.mxu0 %v1791_v21 }
  0x5f   :  { %198 = vmatmul.f32.gmra.mxu0 %v1794_v22 }
  0x67   :  { %201 = vmatmul.f32.gmra.mxu0 %v1797_v23 }
  0x6f   :  { %204 = vmatmul.f32.gmra.mxu0 %v1800_v24 }
  0x77   :  { %207 = vmatmul.f32.gmra.mxu0 %v1803_v29 }
  0x7f   :  { %210 = vmatmul.f32.gmra.mxu0 %v1806_v34 }
  0x87   :  { %213 = vmatmul.f32.gmra.mxu0 %v1809_v39 }
  0x8f   :  { %216 = vmatmul.f32.gmra.mxu0 %v1812_v43 }
  0x97   :  { %219 = vmatmul.f32.gmra.mxu0 %v1815_v45 }
  0x9f   :  { %222 = vmatmul.f32.gmra.mxu0 %v1818_v46 }
  0xa7   :  { %225 = vmatmul.f32.gmra.mxu0 %v1821_v48 }
  0xac   :  { %v181_v50 = vpop.f32.mrf.mxu0 }
  0xad   :  { %v230_v51 = vsel %vm229_vm0, %v181_v50, %v1772_v15 }
  0xae   :  { %263 = vmatmul.f32.vlgmr.msra.gmra.mxu1 %v230_v51 }
  0xb4   :  { %v184_v52 = vpop.f32.mrf.mxu0 }
  0xb5   :  { %v231_v53 = vsel %vm229_vm0, %v184_v52, %v1769_v14 }
  0xb6   :  { %266 = vmatmul.f32.gmra.mxu1 %v231_v53 }
  0xbc   :  { %v187_v54 = vpop.f32.mrf.mxu0 }
  0xbd   :  { %v232_v55 = vsel %vm229_vm0, %v187_v54, %v1766_v13 }
  0xbe   :  { %269 = vmatmul.f32.gmra.mxu1 %v232_v55 }
  0xc4   :  { %v190_v56 = vpop.f32.mrf.mxu0 }
  0xc5   :  { %v233_v57 = vsel %vm229_vm0, %v190_v56, %v1763_v12 }
  0xc6   :  { %272 = vmatmul.f32.gmra.mxu1 %v233_v57 }
  0xcc   :  { %v193_v58 = vpop.f32.mrf.mxu0 }
  0xcd   :  { %v234_v59 = vsel %vm229_vm0, %v193_v58, %v1760_v11 }
  0xce   :  { %275 = vmatmul.f32.gmra.mxu1 %v234_v59 }
  0xd4   :  { %v196_v60 = vpop.f32.mrf.mxu0 }
  0xd5   :  { %v235_v61 = vsel %vm229_vm0, %v196_v60, %v1757_v10 }
  0xd6   :  { %278 = vmatmul.f32.gmra.mxu1 %v235_v61  ;;  %v1877_v61 = vld [vmem:[#allocation7 + $0x200] sm:$0xff] }
  0xdc   :  { %v199_v62 = vpop.f32.mrf.mxu0 }
  0xdd   :  { %v236_v63 = vsel %vm229_vm0, %v199_v62, %v1754_v9  ;;  %v246_v62 = vperm.slane %v1877_v61, 0 }
  0xde   :  { %281 = vmatmul.f32.gmra.mxu1 %v236_v63 }
  0xe4   :  { %v202_v25 = vpop.f32.mrf.mxu0 }
  0xe5   :  { %v237_v26 = vsel %vm229_vm0, %v202_v25, %v1751_v8 }
  0xe6   :  { %284 = vmatmul.f32.gmra.mxu1 %v237_v26 }
  0xec   :  { %v205_v27 = vpop.f32.mrf.mxu0 }
  0xed   :  { %v238_v28 = vsel %vm229_vm0, %v205_v27, %v1748_v7 }
  0xee   :  { %287 = vmatmul.f32.gmra.mxu1 %v238_v28 }
  0xf4   :  { %v208_v30 = vpop.f32.mrf.mxu0 }
  0xf5   :  { %v239_v31 = vsel %vm229_vm0, %v208_v30, %v1745_v6 }
  0xf6   :  { %290 = vmatmul.f32.gmra.mxu1 %v239_v31 }
  0xfc   :  { %v211_v32 = vpop.f32.mrf.mxu0 }
  0xfd   :  { %v240_v33 = vsel %vm229_vm0, %v211_v32, %v1742_v5 }
  0xfe   :  { %293 = vmatmul.f32.gmra.mxu1 %v240_v33 }
 0x104   :  { %v214_v35 = vpop.f32.mrf.mxu0 }
 0x105   :  { %v241_v36 = vsel %vm229_vm0, %v214_v35, %v1739_v4 }
 0x106   :  { %296 = vmatmul.f32.gmra.mxu1 %v241_v36 }
 0x10c   :  { %v217_v37 = vpop.f32.mrf.mxu0 }
 0x10d   :  { %v242_v38 = vsel %vm229_vm0, %v217_v37, %v1736_v3 }
 0x10e   :  { %299 = vmatmul.f32.gmra.mxu1 %v242_v38 }
 0x114   :  { %v220_v40 = vpop.f32.mrf.mxu0 }
 0x115   :  { %v243_v41 = vsel %vm229_vm0, %v220_v40, %v1733_v2 }
 0x116   :  { %302 = vmatmul.f32.gmra.mxu1 %v243_v41 }
 0x11c   :  { %v223_v42 = vpop.f32.mrf.mxu0 }
 0x11d   :  { %v244_v44 = vsel %vm229_vm0, %v223_v42, %v1730_v1 }
 0x11e   :  { %305 = vmatmul.f32.gmra.mxu1 %v244_v44 }
 0x124   :  { %v226_v47 = vpop.f32.mrf.mxu0 }
 0x125   :  { %v245_v50 = vsel %vm229_vm0, %v226_v47, %v1728_v0 }
 0x126   :  { %308 = vmatmul.f32.gmra.mxu1 %v245_v50 }
 0x12b   :  { %v1875_v51 = vpop.f32.mrf.mxu1 }
 0x133   :  { %v267_v52 = vpop.f32.mrf.mxu1 }
 0x134   :  { %v1914_v44 = vadd.f32 %v267_v52, %v246_v62 }
 0x13b   :  { %v270_v53 = vpop.f32.mrf.mxu1 }
 0x143   :  { %v273_v54 = vpop.f32.mrf.mxu1 }
 0x14b   :  { %v276_v55 = vpop.f32.mrf.mxu1 }
 0x14c   :  { %v1904_v37 = vadd.f32 %v276_v55, %v246_v62 }
 0x14e   :  { %v2563_v41 = vmax.f32 %v1904_v37, 0.0 }
 0x153   :  { %v279_v56 = vpop.f32.mrf.mxu1 }
 0x154   :  { %v1927_v52 = vadd.f32 %v279_v56, %v246_v62 }
 0x15b   :  { %v282_v57 = vpop.f32.mrf.mxu1 }
 0x163   :  { %v285_v58 = vpop.f32.mrf.mxu1 }
 0x164   :  { %v1892_v31 = vadd.f32 %v285_v58, %v246_v62  ;;  %v2561_v58 = vmax.f32 %v1914_v44, 0.0 }
 0x166   :  { %v319_v35 = vmax.f32 %v1892_v31, 0.0 }
 0x16b   :  { %v288_v59 = vpop.f32.mrf.mxu1 }
 0x16c   :  { %v1916_v47 = vadd.f32 %v288_v59, %v246_v62 }
 0x173   :  { %v291_v60 = vpop.f32.mrf.mxu1 }
 0x17b   :  { %v294_v63 = vpop.f32.mrf.mxu1 }
 0x17c   :  { %v1880_v25 = vadd.f32 %v294_v63, %v246_v62  ;;  %v320_v63 = vmax.f32 %v1916_v47, 0.0  ;;  %v2583_v47 = vmax.f32 %v1904_v37, 0.0 }
 0x17e   :  { %v322_v26 = vmax.f32 %v1880_v25, 0.0 }
 0x180   :  { %348 = vrot.lane.b32.xlu2 %v322_v26, %s1680_s2 }
 0x183   :  { %v297_v27 = vpop.f32.mrf.mxu1 }
 0x184   :  { %v1886_v28 = vadd.f32 %v297_v27, %v246_v62 }
 0x186   :  { %v323_v30 = vmax.f32 %v1886_v28, 0.0 }
 0x188   :  { %350 = vrot.lane.b32.xlu2 %v323_v30, %s1680_s2 }
 0x18b   :  { %v300_v32 = vpop.f32.mrf.mxu1 }
 0x18c   :  { %v1894_v33 = vadd.f32 %v300_v32, %v246_v62 }
 0x18e   :  { %v324_v36 = vmax.f32 %v1894_v33, 0.0 }
 0x190   :  { %342 = vrot.lane.b32.xlu2 %v319_v35, %s1680_s2  ;;  %352 = vrot.lane.b32.xlu1 %v324_v36, %s1680_s2 }
 0x193   :  { %v303_v38 = vpop.f32.mrf.mxu1 }
 0x194   :  { %v1906_v40 = vadd.f32 %v303_v38, %v246_v62  ;;  %v2564_v38 = vmax.f32 %v1927_v52, 0.0 }
 0x196   :  { %v325_v42 = vmax.f32 %v1906_v40, 0.0 }
 0x198   :  { %336 = vrot.lane.b32.xlu2 %v2563_v41, %s1680_s2  ;;  %354 = vrot.lane.b32.xlu1 %v325_v42, %s1680_s2 }
 0x19b   :  { %v306_v50 = vpop.f32.mrf.mxu1 }
 0x19c   :  { %v307_v55 = vadd.f32 %v306_v50, %v246_v62  ;;  %v1936_v50 = vadd.f32 %v270_v53, %v246_v62  ;;  %v274_v53 = vadd.f32 %v273_v54, %v246_v62 }
 0x19e   :  { %v326_v27 = vmax.f32 %v307_v55, 0.0  ;;  %v292_v55 = vadd.f32 %v291_v60, %v246_v62  ;;  %v2562_v56 = vmax.f32 %v1936_v50, 0.0  ;;  %v315_v60 = vmax.f32 %v274_v53, 0.0 }
 0x1a0   :  { %330 = vrot.lane.b32.xlu2 %v2561_v58, %s1680_s2  ;;  %344 = vrot.lane.b32.xlu1 %v320_v63, %s1680_s2  ;;  %v321_v58 = vmax.f32 %v292_v55, 0.0 }
 0x1a1   :  { %356 = vrot.lane.b32.xlu0 %v326_v27, %s1680_s2 }
 0x1a3   :  { %v309_v59 = vpop.f32.mrf.mxu1 }
 0x1a4   :  { %v310_v32 = vadd.f32 %v309_v59, %v246_v62  ;;  %v283_v59 = vadd.f32 %v282_v57, %v246_v62  ;;  %v265_v57 = vadd.f32 %v1875_v51, %v246_v62 }
 0x1a6   :  { %v327_v40 = vmax.f32 %v310_v32, 0.0  ;;  %v318_v32 = vmax.f32 %v283_v59, 0.0  ;;  %v312_v55 = vmax.f32 %v265_v57, 0.0 }
 0x1a8   :  { %338 = vrot.lane.b32.xlu1 %v2564_v38, %s1680_s2  ;;  %754 = vrot.lane.b32.xlu2 %v1742_v5, %s1680_s2 }
 0x1a9   :  { %358 = vrot.lane.b32.xlu0 %v327_v40, %s1680_s2 }
 0x1b0   :  { %332 = vrot.lane.b32.xlu1 %v2562_v56, %s1680_s2  ;;  %760 = vrot.lane.b32.xlu2 %v1733_v2, %s1680_s2 }
 0x1b1   :  { %346 = vrot.lane.b32.xlu0 %v321_v58, %s1680_s2 }
 0x1b8   :  { %752 = vrot.lane.b32.xlu1 %v1745_v6, %s1680_s2  ;;  %764 = vrot.lane.b32.xlu2 %v1728_v0, %s1680_s2 }
 0x1b9   :  { %340 = vrot.lane.b32.xlu0 %v318_v32, %s1680_s2 }
 0x1c0   :  { %756 = vrot.lane.b32.xlu1 %v1739_v4, %s1680_s2  ;;  %736 = vrot.lane.b32.xlu2 %v1769_v14, %s1680_s2 }
 0x1c1   :  { %334 = vrot.lane.b32.xlu0 %v315_v60, %s1680_s2 }
 0x1c8   :  { %758 = vrot.lane.b32.xlu1 %v1736_v3, %s1680_s2  ;;  %742 = vrot.lane.b32.xlu2 %v1760_v11, %s1680_s2 }
 0x1c9   :  { %328 = vrot.lane.b32.xlu0 %v312_v55, %s1680_s2 }
 0x1d0   :  { %762 = vrot.lane.b32.xlu1 %v1730_v1, %s1680_s2  ;;  %746 = vrot.lane.b32.xlu2 %v1754_v9, %s1680_s2 }
 0x1d1   :  { %750 = vrot.lane.b32.xlu0 %v1748_v7, %s1680_s2 }
 0x1d8   :  { %734 = vrot.lane.b32.xlu1 %v1772_v15, %s1680_s2 }
 0x1d9   :  { %740 = vrot.lane.b32.xlu0 %v1763_v12, %s1680_s2  ;;  %v2131_v12 = vperm.slane %v1877_v61, 1 }
 0x1da   :  { %v349_v9 = vpop.permute.xlu2 %348 }
 0x1e0   :  { %738 = vrot.lane.b32.xlu1 %v1766_v13, %s1680_s2 }
 0x1e2   :  { %v351_v62 = vpop.permute.xlu2 %350 }
 0x1e8   :  { %744 = vrot.lane.b32.xlu1 %v1757_v10, %s1680_s2 }
 0x1ea   :  { %v343_v10 = vpop.permute.xlu2 %342 }
 0x1eb   :  { %v2010_v25 = vadd.f32 %v343_v10, %v319_v35 }
 0x1f0   :  { %748 = vrot.lane.b32.xlu1 %v1751_v8, %s1680_s2 }
 0x1f2   :  { %v337_v28 = vpop.permute.xlu2 %336 }
 0x202   :  { %v353_v11 = vpop.permute.xlu1 %352 }
 0x203   :  { %v1987_v8 = vadd.f32 %v353_v11, %v324_v36  ;;  %v2584_v11 = vmax.f32 %v1936_v50, 0.0  ;;  %v127_v50 = vld [vmem:[#allocation7 + $0xf0] sm:$0xff] }
 0x20a   :  { %v355_v54 = vpop.permute.xlu1 %354 }
 0x20b   :  { %v1982_v41 = vadd.f32 %v355_v54, %v325_v42  ;;  %v1997_v42 = vadd.f32 %v349_v9, %v322_v26  ;;  %v2585_v9 = vmax.f32 %v1914_v44, 0.0  ;;  %v128_v44 = vld [vmem:[#allocation7 + $0xf8] sm:$0xff] }
 0x20c   :  { %459 = vmatpush.msra.mxu3 %v128_v44 }
 0x20e   :  { %460 = vmatpush.msra.mxu3 %v127_v50 }
 0x212   :  { %v345_v56 = vpop.permute.xlu1 %344 }
 0x213   :  { %v357_v51 = vpop.permute.xlu0 %356  ;;  %v2005_v36 = vadd.f32 %v345_v56, %v320_v63  ;;  %v2023_v63 = vadd.f32 %v337_v28, %v2583_v47 }
 0x214   :  { %v1979_v57 = vadd.f32 %v357_v51, %v326_v27 }
 0x21a   :  { %v339_v33 = vpop.permute.xlu1 %338 }
 0x21b   :  { %v359_v59 = vpop.permute.xlu0 %358 }
 0x21c   :  { %v1977_v53 = vadd.f32 %v359_v59, %v327_v40  ;;  %v1992_v40 = vadd.f32 %v351_v62, %v323_v30  ;;  %v114_v62 = vld [vmem:[#allocation7 + $0x88] sm:$0xff] }
 0x21e   :  { %376 = vmatpush.msra.mxu2 %v1977_v53 }
 0x220   :  { %377 = vmatpush.msra.mxu2 %v1979_v57 }
 0x222   :  { %378 = vmatpush.msra.mxu2 %v1982_v41  ;;  %v333_v31 = vpop.permute.xlu1 %332 }
 0x223   :  { %v347_v38 = vpop.permute.xlu0 %346 }
 0x224   :  { %379 = vmatpush.msra.mxu2 %v1987_v8  ;;  %v2000_v27 = vadd.f32 %v347_v38, %v321_v58  ;;  %v2582_v58 = vmax.f32 %v1927_v52, 0.0  ;;  %v2031_v52 = vadd.f32 %v333_v31, %v2584_v11 }
 0x226   :  { %380 = vmatpush.msra.mxu2 %v1992_v40  ;;  %v2018_v38 = vadd.f32 %v339_v33, %v2582_v58 }
 0x228   :  { %381 = vmatpush.msra.mxu2 %v1997_v42 }
 0x22a   :  { %382 = vmatpush.msra.mxu2 %v2000_v27 }
 0x22b   :  { %v341_v30 = vpop.permute.xlu0 %340 }
 0x22c   :  { %383 = vmatpush.msra.mxu2 %v2005_v36  ;;  %v2013_v26 = vadd.f32 %v341_v30, %v318_v32  ;;  %v331_v32 = vpop.permute.xlu2 %330 }
 0x22d   :  { %v361_v37 = vadd.f32 %v331_v32, %v2585_v9  ;;  %v2567_v9 = vmov 0  }
 0x22e   :  { %384 = vmatpush.msra.mxu2 %v2010_v25  ;;  %v1020_v5 = vsel %vm1004_vm5, 1, %v2567_v9  ;;  %v1021_v1 = vsel %vm1005_vm8, 1, %v2567_v9  ;;  %v1019_v6 = vsel %vm1003_vm9, 1, %v2567_v9  ;;  %v1006_v13 = vsel %vm990_vm11, 1, %v2567_v9 }
 0x22f   :  { %v1007_v50 = vsel %vm991_vm12, 1, %v2567_v9  ;;  %v1009_v14 = vsel %vm993_vm13, 1, %v2567_v9  ;;  %vm1234_vm5 = vcmask 1043459   ;;  %vm1236_vm13 = vcmask 1044484  }
 0x230   :  { %385 = vmatpush.msra.mxu2 %v2013_v26 }
 0x232   :  { %386 = vmatpush.msra.mxu2 %v2018_v38 }
 0x233   :  { %v335_v35 = vpop.permute.xlu0 %334 }
 0x234   :  { %v2026_v56 = vadd.f32 %v335_v35, %v315_v60  ;;  %387 = vmatpush.msra.mxu2 %v2023_v63  ;;  %v116_v60 = vld [vmem:[#allocation7 + $0x98] sm:$0xff] }
 0x236   :  { %388 = vmatpush.msra.mxu2 %v2026_v56 }
 0x238   :  { %389 = vmatpush.msra.mxu2 %v2031_v52 }
 0x23a   :  { %390 = vmatpush.msra.mxu2 %v361_v37 }
 0x23b   :  { %v329_v51 = vpop.permute.xlu0 %328 }
 0x23c   :  { %v360_v54 = vadd.f32 %v329_v51, %v312_v55  ;;  %v115_v55 = vld [vmem:[#allocation7 + $0x90] sm:$0xff] }
 0x23e   :  { %391 = vmatpush.msra.mxu2 %v360_v54 }
 0x23f   :  { %392 = vmatmul.f32.vlgmr.msra.gmra.mxu2 %v1775_v16  ;;  %v126_v16 = vld [vmem:[#allocation7 + $0xe8] sm:$0xff] }
 0x240   :  { %461 = vmatpush.msra.mxu3 %v126_v16 }
 0x247   :  { %395 = vmatmul.f32.gmra.mxu2 %v1779_v17  ;;  %v125_v17 = vld [vmem:[#allocation7 + $0xe0] sm:$0xff] }
 0x248   :  { %462 = vmatpush.msra.mxu3 %v125_v17  ;;  %v2128_v17 = vpop.permute.xlu2 %754 }
 0x24f   :  { %398 = vmatmul.f32.gmra.mxu2 %v1782_v18  ;;  %v124_v18 = vld [vmem:[#allocation7 + $0xd8] sm:$0xff] }
 0x250   :  { %463 = vmatpush.msra.mxu3 %v124_v18 }
 0x257   :  { %401 = vmatmul.f32.gmra.mxu2 %v1785_v19  ;;  %v123_v19 = vld [vmem:[#allocation7 + $0xd0] sm:$0xff] }
 0x258   :  { %464 = vmatpush.msra.mxu3 %v123_v19  ;;  %v2136_v19 = vpop.permute.xlu2 %760 }
 0x25f   :  { %404 = vmatmul.f32.gmra.mxu2 %v1788_v20  ;;  %v122_v20 = vld [vmem:[#allocation7 + $0xc8] sm:$0xff] }
 0x260   :  { %465 = vmatpush.msra.mxu3 %v122_v20 }
 0x267   :  { %407 = vmatmul.f32.gmra.mxu2 %v1791_v21  ;;  %v121_v21 = vld [vmem:[#allocation7 + $0xc0] sm:$0xff] }
 0x268   :  { %466 = vmatpush.msra.mxu3 %v121_v21 }
 0x26f   :  { %410 = vmatmul.f32.gmra.mxu2 %v1794_v22  ;;  %v120_v22 = vld [vmem:[#allocation7 + $0xb8] sm:$0xff] }
 0x270   :  { %467 = vmatpush.msra.mxu3 %v120_v22 }
 0x277   :  { %413 = vmatmul.f32.gmra.mxu2 %v1797_v23  ;;  %v119_v23 = vld [vmem:[#allocation7 + $0xb0] sm:$0xff] }
 0x278   :  { %468 = vmatpush.msra.mxu3 %v119_v23  ;;  %v2146_v23 = vpop.permute.xlu2 %764 }
 0x27f   :  { %416 = vmatmul.f32.gmra.mxu2 %v1800_v24  ;;  %v118_v24 = vld [vmem:[#allocation7 + $0xa8] sm:$0xff] }
 0x280   :  { %469 = vmatpush.msra.mxu3 %v118_v24 }
 0x287   :  { %419 = vmatmul.f32.gmra.mxu2 %v1803_v29  ;;  %v117_v29 = vld [vmem:[#allocation7 + $0xa0] sm:$0xff] }
 0x288   :  { %470 = vmatpush.msra.mxu3 %v117_v29 }
 0x28a   :  { %471 = vmatpush.msra.mxu3 %v116_v60  ;;  %v2154_v60 = vpop.permute.xlu1 %752 }
 0x28c   :  { %472 = vmatpush.msra.mxu3 %v115_v55 }
 0x28e   :  { %473 = vmatpush.msra.mxu3 %v114_v62  ;;  %v2160_v62 = vpop.permute.xlu2 %736 }
 0x28f   :  { %422 = vmatmul.f32.gmra.mxu2 %v1806_v34  ;;  %v113_v34 = vld [vmem:[#allocation7 + $0x80] sm:$0xff] }
 0x290   :  { %474 = vmatpush.msra.mxu3 %v113_v34 }
 0x297   :  { %425 = vmatmul.f32.gmra.mxu2 %v1809_v39 }
 0x29f   :  { %428 = vmatmul.f32.gmra.mxu2 %v1812_v43 }
 0x2a7   :  { %431 = vmatmul.f32.gmra.mxu2 %v1815_v45 }
 0x2af   :  { %434 = vmatmul.f32.gmra.mxu2 %v1818_v46 }
 0x2b7   :  { %437 = vmatmul.f32.gmra.mxu2 %v1821_v48 }
 0x2c2   :  { %v393_v39 = vpop.f32.mrf.mxu2 }
 0x2c3   :  { %v442_v59 = vsel %vm441_vm1, %v393_v39, %v360_v54  ;;  %v1018_v54 = vsel %vm1002_vm7, 1, %v2567_v9 }
 0x2c4   :  { %475 = vmatmul.f32.vlgmr.msra.gmra.mxu3 %v442_v59 }
 0x2ca   :  { %v396_v10 = vpop.f32.mrf.mxu2 }
 0x2cb   :  { %v443_v43 = vsel %vm441_vm1, %v396_v10, %v361_v37  ;;  %v1016_v37 = vsel %vm1000_vm4, 1, %v2567_v9  ;;  %v2166_v10 = vpop.permute.xlu1 %756  ;;  %vm1232_vm4 = vcmask 1042434  }
 0x2cc   :  { %478 = vmatmul.f32.gmra.mxu3 %v443_v43  ;;  %v2171_v43 = vpop.permute.xlu2 %742 }
 0x2d2   :  { %v399_v33 = vpop.f32.mrf.mxu2 }
 0x2d3   :  { %v444_v45 = vsel %vm441_vm1, %v399_v33, %v2031_v52  ;;  %v2565_v52 = vmov 64  }
 0x2d4   :  { %481 = vmatmul.f32.gmra.mxu3 %v444_v45  ;;  %1490 = vset.pattern.permute.xlu2 %v2565_v52 }
 0x2d5   :  { %1492 = vset.pattern.permute.xlu0 %v2565_v52  ;;  %1491 = vset.pattern.permute.xlu1 %v2565_v52 }
 0x2d6   :  { %1053 = vperm.xlu0 %1492, %v1016_v37  }
 0x2da   :  { %v402_v46 = vpop.f32.mrf.mxu2 }
 0x2db   :  { %v445_v48 = vsel %vm441_vm1, %v402_v46, %v2026_v56 }
 0x2dc   :  { %484 = vmatmul.f32.gmra.mxu3 %v445_v48  ;;  %v2180_v48 = vpop.permute.xlu1 %758 }
 0x2de   :  { %1059 = vperm.xlu0 %1492, %v1018_v54  }
 0x2e2   :  { %v405_v28 = vpop.f32.mrf.mxu2 }
 0x2e3   :  { %v446_v30 = vsel %vm441_vm1, %v405_v28, %v2023_v63 }
 0x2e4   :  { %487 = vmatmul.f32.gmra.mxu3 %v446_v30 }
 0x2ea   :  { %v408_v58 = vpop.f32.mrf.mxu2 }
 0x2eb   :  { %v447_v47 = vsel %vm441_vm1, %v408_v58, %v2018_v38  ;;  %v2185_v58 = vpop.permute.xlu2 %746 }
 0x2ec   :  { %490 = vmatmul.f32.gmra.mxu3 %v447_v47 }
 0x2f2   :  { %v411_v31 = vpop.f32.mrf.mxu2 }
 0x2f3   :  { %v448_v35 = vsel %vm441_vm1, %v411_v31, %v2013_v26  ;;  %v2191_v31 = vpop.permute.xlu1 %762 }
 0x2f4   :  { %493 = vmatmul.f32.gmra.mxu3 %v448_v35 }
 0x2fa   :  { %v414_v56 = vpop.f32.mrf.mxu2 }
 0x2fb   :  { %v449_v32 = vsel %vm441_vm1, %v414_v56, %v2010_v25  ;;  %v1014_v25 = vsel %vm998_vm2, 1, %v2567_v9  ;;  %vm1230_vm2 = vcmask 1041409  }
 0x2fc   :  { %496 = vmatmul.f32.gmra.mxu3 %v449_v32  ;;  %1047 = vperm.xlu2 %1490, %v1014_v25  }
 0x302   :  { %v417_v63 = vpop.f32.mrf.mxu2 }
 0x303   :  { %v450_v11 = vsel %vm441_vm1, %v417_v63, %v2005_v36 }
 0x304   :  { %499 = vmatmul.f32.gmra.mxu3 %v450_v11 }
 0x30a   :  { %v420_v38 = vpop.f32.mrf.mxu2 }
 0x30b   :  { %v451_v26 = vsel %vm441_vm1, %v420_v38, %v2000_v27  ;;  %v1017_v27 = vsel %vm1001_vm3, 1, %v2567_v9 }
 0x30c   :  { %502 = vmatmul.f32.gmra.mxu3 %v451_v26  ;;  %1056 = vperm.xlu2 %1490, %v1017_v27   ;;  %v2205_v26 = vpop.permute.xlu1 %734 }
 0x312   :  { %v423_v36 = vpop.f32.mrf.mxu2 }
 0x313   :  { %v452_v7 = vsel %vm441_vm1, %v423_v36, %v1997_v42  ;;  %v1015_v42 = vsel %vm999_vm6, 1, %v2567_v9 }
 0x314   :  { %505 = vmatmul.f32.gmra.mxu3 %v452_v7  ;;  %1065 = vperm.xlu2 %1490, %v1020_v5  }
 0x315   :  { %1050 = vperm.xlu1 %1491, %v1015_v42  }
 0x31a   :  { %v426_v51 = vpop.f32.mrf.mxu2 }
 0x31b   :  { %v453_v4 = vsel %vm441_vm1, %v426_v51, %v1992_v40  ;;  %v1008_v40 = vsel %vm992_vm10, 1, %v2567_v9  ;;  %v2217_v51 = vpop.permute.xlu1 %738 }
 0x31c   :  { %508 = vmatmul.f32.gmra.mxu3 %v453_v4  ;;  %1068 = vperm.xlu2 %1490, %v1021_v1   ;;  %v2222_v4 = vpop.permute.xlu0 %750 }
 0x31d   :  { %1062 = vperm.xlu1 %1491, %v1019_v6   ;;  %1029 = vperm.xlu0 %1492, %v1008_v40  }
 0x322   :  { %v429_v3 = vpop.f32.mrf.mxu2 }
 0x323   :  { %v454_v44 = vsel %vm441_vm1, %v429_v3, %v1987_v8  ;;  %v2233_v3 = vpop.permute.xlu1 %744 }
 0x324   :  { %511 = vmatmul.f32.gmra.mxu3 %v454_v44  ;;  %1023 = vperm.xlu2 %1490, %v1006_v13   ;;  %v2235_v6 = vpop.permute.xlu0 %740 }
 0x325   :  { %1026 = vperm.xlu1 %1491, %v1007_v50  }
 0x32a   :  { %v432_v0 = vpop.f32.mrf.mxu2 }
 0x32b   :  { %v455_v2 = vsel %vm441_vm1, %v432_v0, %v1982_v41  ;;  %v2246_v13 = vpop.permute.xlu1 %748 }
 0x32c   :  { %514 = vmatmul.f32.gmra.mxu3 %v455_v2  ;;  %1032 = vperm.xlu2 %1490, %v1009_v14  }
 0x332   :  { %v435_v8 = vpop.f32.mrf.mxu2 }
 0x333   :  { %v456_v15 = vsel %vm441_vm1, %v435_v8, %v1979_v57 }
 0x334   :  { %517 = vmatmul.f32.gmra.mxu3 %v456_v15  ;;  %1493 = vset.pattern.permute.xlu2 %v2567_v9 }
 0x33a   :  { %v438_v16 = vpop.f32.mrf.mxu2 }
 0x33b   :  { %v457_v41 = vsel %vm441_vm1, %v438_v16, %v1977_v53 }
 0x33c   :  { %520 = vmatmul.f32.gmra.mxu3 %v457_v41 }
 0x347   :  { %v476_v18 = vpop.f32.mrf.mxu3 }
 0x348   :  { %v2134_v57 = vadd.f32 %v476_v18, %v2131_v12  ;;  %v2251_v15 = vpop.permute.xlu0 %1053 }
 0x349   :  { %vm1080_vm9 = vcmp.eq.s32.totalorder %v2251_v15, 1 }
 0x34a   :  { %v524_v20 = vmax.f32 %v2134_v57, 0.0 }
 0x34c   :  { %540 = vrot.lane.b32.xlu0 %v524_v20, %s1680_s2 }
 0x34f   :  { %v479_v53 = vpop.f32.mrf.mxu3 }
 0x350   :  { %v2143_v21 = vadd.f32 %v479_v53, %v2131_v12 }
 0x352   :  { %v525_v22 = vmax.f32 %v2143_v21, 0.0 }
 0x354   :  { %542 = vrot.lane.b32.xlu1 %v525_v22, %s1680_s2 }
 0x356   :  { %v2197_v63 = vpop.permute.xlu2 %1047 }
 0x357   :  { %v482_v24 = vpop.f32.mrf.mxu3  ;;  %vm1078_vm7 = vcmp.eq.s32.totalorder %v2197_v63, 1 }
 0x358   :  { %v2152_v29 = vadd.f32 %v482_v24, %v2131_v12 }
 0x35a   :  { %v526_v55 = vmax.f32 %v2152_v29, 0.0 }
 0x35c   :  { %544 = vrot.lane.b32.xlu2 %v526_v55, %s1680_s2 }
 0x35f   :  { %v485_v34 = vpop.f32.mrf.mxu3 }
 0x360   :  { %v2163_v39 = vadd.f32 %v485_v34, %v2131_v12  ;;  %v2263_v34 = vpop.permute.xlu0 %1059 }
 0x361   :  { %vm1082_vm8 = vcmp.eq.s32.totalorder %v2263_v34, 1 }
 0x362   :  { %v2581_v59 = vmax.f32 %v2163_v39, 0.0 }
 0x364   :  { %546 = vrot.lane.b32.xlu0 %v2581_v59, %s1680_s2 }
 0x366   :  { %v2211_v36 = vpop.permute.xlu2 %1056 }
 0x367   :  { %v488_v33 = vpop.f32.mrf.mxu3  ;;  %vm1081_vm10 = vcmp.eq.s32.totalorder %v2211_v36, 1 }
 0x368   :  { %v2174_v45 = vadd.f32 %v488_v33, %v2131_v12 }
 0x36a   :  { %v2580_v46 = vmax.f32 %v2174_v45, 0.0 }
 0x36c   :  { %548 = vrot.lane.b32.xlu1 %v2580_v46, %s1680_s2 }
 0x36e   :  { %v2224_v5 = vpop.permute.xlu2 %1065 }
 0x36f   :  { %v491_v28 = vpop.f32.mrf.mxu3 }
 0x370   :  { %v2183_v30 = vadd.f32 %v491_v28, %v2131_v12 }
 0x372   :  { %v2578_v47 = vmax.f32 %v2183_v30, 0.0 }
 0x374   :  { %550 = vrot.lane.b32.xlu2 %v2578_v47, %s1680_s2 }
 0x376   :  { %v2240_v0 = vpop.permute.xlu2 %1068 }
 0x377   :  { %v494_v35 = vpop.f32.mrf.mxu3  ;;  %vm1085_vm11 = vcmp.eq.s32.totalorder %v2240_v0, 1 }
 0x378   :  { %v2194_v56 = vadd.f32 %v494_v35, %v2131_v12 }
 0x37a   :  { %v2576_v32 = vmax.f32 %v2194_v56, 0.0 }
 0x37c   :  { %552 = vrot.lane.b32.xlu0 %v2576_v32, %s1680_s2 }
 0x37e   :  { %v1024_v16 = vpop.permute.xlu2 %1023 }
 0x37f   :  { %v497_v11 = vpop.f32.mrf.mxu3  ;;  %vm1070_vm15 = vcmp.eq.s32.totalorder %v1024_v16, 1 }
 0x380   :  { %v2203_v38 = vadd.f32 %v497_v11, %v2131_v12 }
 0x382   :  { %v2574_v25 = vmax.f32 %v2203_v38, 0.0 }
 0x384   :  { %554 = vrot.lane.b32.xlu1 %v2574_v25, %s1680_s2 }
 0x386   :  { %v1033_v33 = vpop.permute.xlu2 %1032 }
 0x387   :  { %v500_v7 = vpop.f32.mrf.mxu3  ;;  %v2260_v53 = vpop.permute.xlu1 %1050  ;;  %vm1073_vm3 = vcmp.eq.s32.totalorder %v1033_v33, 1 }
 0x388   :  { %v2214_v27 = vadd.f32 %v500_v7, %v2131_v12  ;;  %vm1079_vm6 = vcmp.eq.s32.totalorder %v2260_v53, 1 }
 0x38a   :  { %v2573_v37 = vmax.f32 %v2214_v27, 0.0 }
 0x38c   :  { %556 = vrot.lane.b32.xlu1 %v2573_v37, %s1680_s2 }
 0x38f   :  { %v503_v42 = vpop.f32.mrf.mxu3  ;;  %v2272_v7 = vpop.permute.xlu1 %1062 }
 0x390   :  { %v2227_v54 = vadd.f32 %v503_v42, %v2131_v12  ;;  %v1030_v42 = vpop.permute.xlu0 %1029 }
 0x391   :  { %vm1072_vm14 = vcmp.eq.s32.totalorder %v1030_v42, 1 }
 0x392   :  { %v2577_v1 = vmax.f32 %v2227_v54, 0.0 }
 0x394   :  { %558 = vrot.lane.b32.xlu2 %v2577_v1, %s1680_s2 }
 0x397   :  { %v506_v40 = vpop.f32.mrf.mxu3 }
 0x398   :  { %v2238_v44 = vadd.f32 %v506_v40, %v2131_v12 }
 0x39a   :  { %v2571_v2 = vmax.f32 %v2238_v44, 0.0 }
 0x39c   :  { %560 = vrot.lane.b32.xlu0 %v2571_v2, %s1680_s2 }
 0x39f   :  { %v509_v50 = vpop.f32.mrf.mxu3 }
 0x3a0   :  { %v2249_v8 = vadd.f32 %v509_v50, %v2131_v12 }
 0x3a2   :  { %v2570_v14 = vmax.f32 %v2249_v8, 0.0 }
 0x3a4   :  { %562 = vrot.lane.b32.xlu1 %v2570_v14, %s1680_s2 }
 0x3a7   :  { %v512_v41 = vpop.f32.mrf.mxu3 }
 0x3a8   :  { %v2258_v18 = vadd.f32 %v512_v41, %v2131_v12 }
 0x3aa   :  { %v2572_v24 = vmax.f32 %v2258_v18, 0.0 }
 0x3ac   :  { %564 = vrot.lane.b32.xlu2 %v2572_v24, %s1680_s2 }
 0x3af   :  { %v515_v28 = vpop.f32.mrf.mxu3 }
 0x3b0   :  { %v2269_v35 = vadd.f32 %v515_v28, %v2131_v12 }
 0x3b2   :  { %v2569_v11 = vmax.f32 %v2269_v35, 0.0 }
 0x3b4   :  { %566 = vrot.lane.b32.xlu0 %v2569_v11, %s1680_s2  ;;  %v1027_v11 = vpop.permute.xlu1 %1026 }
 0x3b5   :  { %vm1071_vm0 = vcmp.eq.s32.totalorder %v1027_v11, 1 }
 0x3b6   :  { %v545_v40 = vpop.permute.xlu2 %544 }
 0x3b7   :  { %v518_v50 = vpop.f32.mrf.mxu3  ;;  %v2279_v41 = vadd.f32 %v545_v40, %v526_v55 }
 0x3b8   :  { %v2282_v52 = vadd.f32 %v518_v50, %v2131_v12 }
 0x3b9   :  { %v1088_v9 = vsel %vm1072_vm14, %v2279_v41, -3e+38  ;;  %vm1083_vm14 = vcmp.eq.s32.totalorder %v2272_v7, 1 }
 0x3ba   :  { %v2575_v28 = vmax.f32 %v2282_v52, 0.0  ;;  %v1114_v2 = vrot.slane %v1088_v9, 4 }
 0x3bc   :  { %568 = vrot.lane.b32.xlu1 %v2575_v28, %s1680_s2  ;;  %v1115_v37 = vmax.f32 %v1088_v9, %v1114_v2 }
 0x3be   :  { %v541_v14 = vpop.permute.xlu0 %540 }
 0x3bf   :  { %v2291_v29 = vadd.f32 %v541_v14, %v524_v20  ;;  %v521_v55 = vpop.f32.mrf.mxu3  ;;  %v1116_v20 = vrot.slane %v1115_v37, 2 }
 0x3c0   :  { %v2294_v40 = vadd.f32 %v521_v55, %v2131_v12 }
 0x3c1   :  { %v1086_v42 = vsel %vm1070_vm15, %v2291_v29, -3e+38  ;;  %v1117_v32 = vmax.f32 %v1115_v37, %v1116_v20  ;;  %vm1084_vm15 = vcmp.eq.s32.totalorder %v2224_v5, 1 }
 0x3c2   :  { %v1102_v50 = vrot.slane %v1086_v42, 4  ;;  %v2579_v24 = vmax.f32 %v2294_v40, 0.0  ;;  %v2596_v36 = vmax.f32 %v2294_v40, 0.0 }
 0x3c4   :  { %v1103_v25 = vmax.f32 %v1086_v42, %v1102_v50  ;;  %570 = vrot.lane.b32.xlu2 %v2579_v24, %s1680_s2  ;;  %v1118_v42 = vrot.slane %v1117_v32, 1 }
 0x3c6   :  { %v1104_v16 = vrot.slane %v1103_v25, 2  ;;  %v543_v57 = vpop.permute.xlu1 %542  ;;  %v1119_v11 = vmax.f32 %v1117_v32, %v1118_v42  ;;  %v2314_v32 = vperm.slane %v1877_v61, 4  ;;  %v2587_v42 = vmax.f32 %v2174_v45, 0.0 }
 0x3c7   :  { %v2303_v14 = vadd.f32 %v543_v57, %v525_v22  ;;  %v2589_v45 = vmax.f32 %v2227_v54, 0.0 }
 0x3c8   :  { %v1105_v55 = vmax.f32 %v1103_v25, %v1104_v16  ;;  %v1200_v57 = vmax.f32 %v1119_v11, 0.0  ;;  %v2586_v25 = vmax.f32 %v2163_v39, 0.0 }
 0x3c9   :  { %v1087_v12 = vsel %vm1071_vm0, %v2303_v14, -3e+38  ;;  %vm1238_vm0 = vcmask 1045509  }
 0x3ca   :  { %v1108_v28 = vrot.slane %v1087_v12, 4  ;;  %v1106_v9 = vrot.slane %v1105_v55, 1 }
 0x3cc   :  { %v1109_v1 = vmax.f32 %v1087_v12, %v1108_v28  ;;  %v1107_v47 = vmax.f32 %v1105_v55, %v1106_v9 }
 0x3ce   :  { %v1110_v2 = vrot.slane %v1109_v1, 2  ;;  %v1198_v59 = vmax.f32 %v1107_v47, 0.0 }
 0x3d0   :  { %v1111_v50 = vmax.f32 %v1109_v1, %v1110_v2  ;;  %v551_v2 = vpop.permute.xlu2 %550 }
 0x3d2   :  { %v1112_v24 = vrot.slane %v1111_v50, 1 }
 0x3d4   :  { %v1113_v46 = vmax.f32 %v1111_v50, %v1112_v24 }
 0x3d6   :  { %v1199_v21 = vmax.f32 %v1113_v46, 0.0  ;;  %v547_v22 = vpop.permute.xlu0 %546  ;;  %v589_v46 = vmul.f32 %v2314_v32, %v2291_v29 }
 0x3d7   :  { %v2308_v16 = vadd.f32 %v547_v22, %v2586_v25  ;;  %v2588_v25 = vmax.f32 %v2183_v30, 0.0 }
 0x3d8   :  { %v1269_v37 = vsel %vm1230_vm2, %v1199_v21, %v1198_v59  ;;  %v590_v59 = vmul.f32 %v2314_v32, %v2303_v14  ;;  %v591_v21 = vmul.f32 %v2314_v32, %v2279_v41 }
 0x3d9   :  { %v1089_v28 = vsel %vm1073_vm3, %v2308_v16, -3e+38  ;;  %v1270_v1 = vsel %vm1232_vm4, %v1200_v57, %v1269_v37  ;;  %v592_v55 = vmul.f32 %v2314_v32, %v2308_v16  ;;  %v2335_v37 = vadd.f32 %v551_v2, %v2588_v25 }
 0x3da   :  { %v1120_v20 = vrot.slane %v1089_v28, 4  ;;  %v2592_v2 = vmax.f32 %v2214_v27, 0.0 }
 0x3dc   :  { %v1121_v24 = vmax.f32 %v1089_v28, %v1120_v20  ;;  %v594_v20 = vmul.f32 %v2314_v32, %v2335_v37 }
 0x3de   :  { %v1122_v47 = vrot.slane %v1121_v24, 2  ;;  %605 = vadd.xlane.f32.xlu0 %v589_v46  ;;  %v549_v9 = vpop.permute.xlu1 %548 }
 0x3df   :  { %v2324_v50 = vadd.f32 %v549_v9, %v2587_v42 }
 0x3e0   :  { %v1123_v33 = vmax.f32 %v1121_v24, %v1122_v47 }
 0x3e1   :  { %v593_v22 = vmul.f32 %v2314_v32, %v2324_v50 }
 0x3e2   :  { %v1124_v39 = vrot.slane %v1123_v33, 1 }
 0x3e4   :  { %v1125_v12 = vmax.f32 %v1123_v33, %v1124_v39  ;;  %v2590_v33 = vmax.f32 %v2194_v56, 0.0  ;;  %v2591_v39 = vmax.f32 %v2203_v38, 0.0 }
 0x3e6   :  { %v1201_v61 = vmax.f32 %v1125_v12, 0.0  ;;  %607 = vadd.xlane.f32.xlu1 %v590_v59  ;;  %611 = vadd.xlane.f32.xlu0 %v592_v55 }
 0x3e8   :  { %v2327_v11 = vsel %vm1234_vm5, %v1201_v61, %v1270_v1 }
 0x3ed   :  { %609 = vadd.xlane.f32.xlu2 %v591_v21 }
 0x3ee   :  { %v559_v57 = vpop.permute.xlu2 %558  ;;  %613 = vadd.xlane.f32.xlu1 %v593_v22  ;;  %v553_v24 = vpop.permute.xlu0 %552 }
 0x3ef   :  { %v2339_v28 = vadd.f32 %v559_v57, %v2589_v45  ;;  %v2347_v30 = vadd.f32 %v553_v24, %v2590_v33 }
 0x3f1   :  { %v1095_v1 = vsel %vm1079_vm6, %v2339_v28, -3e+38  ;;  %v595_v59 = vmul.f32 %v2314_v32, %v2347_v30  ;;  %v598_v61 = vmul.f32 %v2314_v32, %v2339_v28  ;;  %vm1240_vm6 = vcmask 1046534  }
 0x3f2   :  { %v1156_v46 = vrot.slane %v1095_v1, 4 }
 0x3f4   :  { %v1157_v12 = vmax.f32 %v1095_v1, %v1156_v46 }
 0x3f5   :  { %615 = vadd.xlane.f32.xlu2 %v594_v20  ;;  %v2593_v20 = vmax.f32 %v2258_v18, 0.0 }
 0x3f6   :  { %v555_v47 = vpop.permute.xlu1 %554  ;;  %v1158_v55 = vrot.slane %v1157_v12, 2 }
 0x3f7   :  { %v2351_v54 = vadd.f32 %v555_v47, %v2591_v39 }
 0x3f8   :  { %v1159_v42 = vmax.f32 %v1157_v12, %v1158_v55  ;;  %v2594_v55 = vmax.f32 %v2238_v44, 0.0  ;;  %v2595_v44 = vmax.f32 %v2249_v8, 0.0 }
 0x3f9   :  { %v596_v53 = vmul.f32 %v2314_v32, %v2351_v54 }
 0x3fa   :  { %v1160_v25 = vrot.slane %v1159_v42, 1 }
 0x3fb   :  { %619 = vadd.xlane.f32.xlu0 %v596_v53 }
 0x3fc   :  { %v1161_v24 = vmax.f32 %v1159_v42, %v1160_v25 }
 0x3fd   :  { %617 = vadd.xlane.f32.xlu2 %v595_v59 }
 0x3fe   :  { %v557_v9 = vpop.permute.xlu1 %556  ;;  %v1207_v39 = vmax.f32 %v1161_v24, 0.0 }
 0x3ff   :  { %v2359_v56 = vadd.f32 %v557_v9, %v2592_v2 }
 0x401   :  { %v1094_v38 = vsel %vm1078_vm7, %v2359_v56, -3e+38  ;;  %v597_v22 = vmul.f32 %v2314_v32, %v2359_v56  ;;  %vm1242_vm7 = vcmask 1047559  }
 0x402   :  { %v1150_v21 = vrot.slane %v1094_v38, 4 }
 0x403   :  { %623 = vadd.xlane.f32.xlu0 %v598_v61 }
 0x404   :  { %v1151_v57 = vmax.f32 %v1094_v38, %v1150_v21 }
 0x405   :  { %621 = vadd.xlane.f32.xlu2 %v597_v22 }
 0x406   :  { %v1152_v45 = vrot.slane %v1151_v57, 2  ;;  %v565_v27 = vpop.permute.xlu2 %564 }
 0x407   :  { %v2369_v63 = vadd.f32 %v565_v27, %v2593_v20 }
 0x408   :  { %v1153_v1 = vmax.f32 %v1151_v57, %v1152_v45 }
 0x409   :  { %v1098_v33 = vsel %vm1082_vm8, %v2369_v63, -3e+38 }
 0x40a   :  { %v1154_v46 = vrot.slane %v1153_v1, 1  ;;  %v1174_v59 = vrot.slane %v1098_v33, 4 }
 0x40c   :  { %v1155_v47 = vmax.f32 %v1153_v1, %v1154_v46  ;;  %v1175_v61 = vmax.f32 %v1098_v33, %v1174_v59 }
 0x40e   :  { %v1206_v53 = vmax.f32 %v1155_v47, 0.0  ;;  %v561_v12 = vpop.permute.xlu0 %560  ;;  %v1176_v57 = vrot.slane %v1175_v61, 2 }
 0x40f   :  { %v2375_v9 = vadd.f32 %v561_v12, %v2594_v55 }
 0x410   :  { %v1276_v18 = vsel %vm1230_vm2, %v1207_v39, %v1206_v53  ;;  %v1177_v24 = vmax.f32 %v1175_v61, %v1176_v57 }
 0x411   :  { %v1096_v2 = vsel %vm1080_vm9, %v2375_v9, -3e+38  ;;  %v599_v34 = vmul.f32 %v2314_v32, %v2375_v9 }
 0x412   :  { %v1162_v38 = vrot.slane %v1096_v2, 4  ;;  %v1178_v8 = vrot.slane %v1177_v24, 1 }
 0x413   :  { %625 = vadd.xlane.f32.xlu1 %v599_v34 }
 0x414   :  { %v1163_v42 = vmax.f32 %v1096_v2, %v1162_v38  ;;  %v601_v2 = vmul.f32 %v2314_v32, %v2369_v63  ;;  %v1179_v38 = vmax.f32 %v1177_v24, %v1178_v8  ;;  %v2599_v8 = vmax.f32 %v2282_v52, 0.0 }
 0x416   :  { %v1164_v21 = vrot.slane %v1163_v42, 2  ;;  %v563_v22 = vpop.permute.xlu1 %562  ;;  %v1210_v57 = vmax.f32 %v1179_v38, 0.0 }
 0x417   :  { %v2384_v25 = vadd.f32 %v563_v22, %v2595_v44  ;;  %v2597_v44 = vmax.f32 %v2269_v35, 0.0 }
 0x418   :  { %v1165_v15 = vmax.f32 %v1163_v42, %v1164_v21  ;;  %v1542_v21 = vld [vmem:[#allocation2 + $0x28] sm:$0xff] }
 0x419   :  { %v1097_v45 = vsel %vm1081_vm10, %v2384_v25, -3e+38  ;;  %v600_v27 = vmul.f32 %v2314_v32, %v2384_v25  ;;  %vm995_vm12 = vcmp.gt.f32.partialorder %v1542_v21, 0.0 }
 0x41a   :  { %v1166_v1 = vrot.slane %v1165_v15, 1  ;;  %v1168_v20 = vrot.slane %v1097_v45, 4 }
 0x41b   :  { %627 = vadd.xlane.f32.xlu2 %v600_v27 }
 0x41c   :  { %v1167_v46 = vmax.f32 %v1165_v15, %v1166_v1  ;;  %v1169_v47 = vmax.f32 %v1097_v45, %v1168_v20  ;;  %v2598_v45 = vmov 0  }
 0x41d   :  { %v1011_v0 = vsel %vm995_vm12, 1, %v2598_v45 }
 0x41e   :  { %v1208_v33 = vmax.f32 %v1167_v46, 0.0  ;;  %v1170_v39 = vrot.slane %v1169_v47, 2  ;;  %v571_v53 = vpop.permute.xlu2 %570 }
 0x41f   :  { %v2393_v55 = vadd.f32 %v571_v53, %v2596_v36 }
 0x420   :  { %v1277_v12 = vsel %vm1232_vm4, %v1208_v33, %v1276_v18  ;;  %v1171_v59 = vmax.f32 %v1169_v47, %v1170_v39 }
 0x421   :  { %v1101_v42 = vsel %vm1085_vm11, %v2393_v55, -3e+38  ;;  %v604_v20 = vmul.f32 %v2314_v32, %v2393_v55 }
 0x422   :  { %v1172_v34 = vrot.slane %v1171_v59, 1  ;;  %v1192_v40 = vrot.slane %v1101_v42, 4 }
 0x423   :  { %629 = vadd.xlane.f32.xlu2 %v601_v2 }
 0x424   :  { %v1173_v61 = vmax.f32 %v1171_v59, %v1172_v34  ;;  %v1193_v35 = vmax.f32 %v1101_v42, %v1192_v40  ;;  %v1543_v40 = vld [vmem:[#allocation2 + $0x20] sm:$0xff] }
 0x425   :  { %vm994_vm3 = vcmp.gt.f32.partialorder %v1543_v40, 0.0 }
 0x426   :  { %v1209_v22 = vmax.f32 %v1173_v61, 0.0  ;;  %v567_v18 = vpop.permute.xlu0 %566  ;;  %v1194_v53 = vrot.slane %v1193_v35, 2 }
 0x427   :  { %v2401_v15 = vadd.f32 %v567_v18, %v2597_v44 }
 0x428   :  { %v1278_v27 = vsel %vm1234_vm5, %v1209_v22, %v1277_v12  ;;  %v1195_v38 = vmax.f32 %v1193_v35, %v1194_v53 }
 0x429   :  { %v1099_v1 = vsel %vm1083_vm14, %v2401_v15, -3e+38  ;;  %v602_v24 = vmul.f32 %v2314_v32, %v2401_v15  ;;  %v1279_v46 = vsel %vm1236_vm13, %v1210_v57, %v1278_v27  ;;  %v1010_v27 = vsel %vm994_vm3, 1, %v2598_v45 }
 0x42a   :  { %v1180_v47 = vrot.slane %v1099_v1, 4  ;;  %v1196_v18 = vrot.slane %v1195_v38, 1 }
 0x42b   :  { %635 = vadd.xlane.f32.xlu2 %v604_v20  ;;  %631 = vadd.xlane.f32.xlu0 %v602_v24 }
 0x42c   :  { %v1181_v33 = vmax.f32 %v1099_v1, %v1180_v47  ;;  %1038 = vperm.xlu1 %1491, %v1011_v0   ;;  %v1197_v44 = vmax.f32 %v1195_v38, %v1196_v18 }
 0x42e   :  { %v1182_v7 = vrot.slane %v1181_v33, 2  ;;  %v569_v39 = vpop.permute.xlu1 %568  ;;  %v1213_v20 = vmax.f32 %v1197_v44, 0.0 }
 0x42f   :  { %v2414_v12 = vadd.f32 %v569_v39, %v2599_v8 }
 0x430   :  { %v1183_v59 = vmax.f32 %v1181_v33, %v1182_v7 }
 0x431   :  { %v1100_v36 = vsel %vm1084_vm15, %v2414_v12, -3e+38  ;;  %v603_v53 = vmul.f32 %v2314_v32, %v2414_v12 }
 0x432   :  { %v1184_v2 = vrot.slane %v1183_v59, 1  ;;  %v1186_v34 = vrot.slane %v1100_v36, 4 }
 0x434   :  { %v1185_v61 = vmax.f32 %v1183_v59, %v1184_v2  ;;  %v1187_v42 = vmax.f32 %v1100_v36, %v1186_v34  ;;  %1494 = vset.pattern.permute.xlu1 %v2598_v45 }
 0x436   :  { %v1211_v21 = vmax.f32 %v1185_v61, 0.0  ;;  %v1188_v22 = vrot.slane %v1187_v42, 2 }
 0x438   :  { %v1189_v57 = vmax.f32 %v1187_v42, %v1188_v22  ;;  %v1280_v52 = vsel %vm1238_vm0, %v1211_v21, %v1279_v46  ;;  %v2426_v46 = vld [vmem:[#allocation7 + $0x200] sm:$0xff] }
 0x439   :  { %v2429_v35 = vperm.slane %v2426_v46, 5 }
 0x43a   :  { %v1190_v5 = vrot.slane %v1189_v57, 1 }
 0x43c   :  { %v1191_v0 = vmax.f32 %v1189_v57, %v1190_v5 }
 0x43e   :  { %v1212_v1 = vmax.f32 %v1191_v0, 0.0 }
 0x43f   :  { %1035 = vperm.xlu0 %1492, %v1010_v27  }
 0x440   :  { %v1281_v24 = vsel %vm1240_vm6, %v1212_v1, %v1280_v52 }
 0x441   :  { %v2423_v47 = vsel %vm1242_vm7, %v1213_v20, %v1281_v24 }
 0x447   :  { %1495 = vset.pattern.permute.xlu0 %v2598_v45 }
 0x451   :  { %v606_v33 = vpop.xlane.xlu0 %605 }
 0x452   :  { %v638_v7 = vadd.f32 %v2429_v35, %v606_v33 }
 0x454   :  { %v654_v39 = vmul.f32 0.5, %v638_v7 }
 0x456   :  { %1498 = vtanh.f32 %v654_v39  ;;  %633 = vadd.xlane.f32.xlu1 %v603_v53 }
 0x459   :  { %v608_v8 = vpop.xlane.xlu1 %607  ;;  %v612_v59 = vpop.xlane.xlu0 %611 }
 0x45a   :  { %v639_v36 = vadd.f32 %v2429_v35, %v608_v8  ;;  %v641_v2 = vadd.f32 %v2429_v35, %v612_v59 }
 0x45c   :  { %v1499_v34 = vpop.eup %1498  ;;  %v655_v38 = vmul.f32 0.5, %v639_v36  ;;  %v657_v61 = vmul.f32 0.5, %v641_v2 }
 0x45d   :  { %v686_v42 = vadd.f32 1.0, %v1499_v34 }
 0x45e   :  { %1500 = vtanh.f32 %v655_v38 }
 0x45f   :  { %v702_v21 = vmul.f32 0.5, %v686_v42  ;;  %1502 = vtanh.f32 %v657_v61 }
 0x460   :  { %v610_v22 = vpop.xlane.xlu2 %609 }
 0x461   :  { %v640_v18 = vadd.f32 %v2429_v35, %v610_v22  ;;  %v782_v32 = vmul.f32 %v2205_v26, %v702_v21 }
 0x463   :  { %v656_v57 = vmul.f32 0.5, %v640_v18  ;;  %800 = vperm.xlu2 %1493, %v782_v32  }
 0x464   :  { %v1501_v52 = vpop.eup %1500 }
 0x465   :  { %v1503_v40 = vpop.eup %1502  ;;  %v687_v5 = vadd.f32 1.0, %v1501_v52  ;;  %1504 = vtanh.f32 %v656_v57 }
 0x466   :  { %v689_v44 = vadd.f32 1.0, %v1503_v40 }
 0x467   :  { %v703_v1 = vmul.f32 0.5, %v687_v5 }
 0x468   :  { %v705_v0 = vmul.f32 0.5, %v689_v44  ;;  %v2438_v27 = vpop.xlane.xlu2 %615 }
 0x469   :  { %v783_v7 = vmul.f32 %v2160_v62, %v703_v1  ;;  %v614_v62 = vpop.xlane.xlu1 %613 }
 0x46a   :  { %v785_v20 = vmul.f32 %v2235_v6, %v705_v0 }
 0x46b   :  { %v1505_v24 = vpop.eup %1504 }
 0x46c   :  { %815 = vperm.xlu2 %1493, %v785_v20   ;;  %v688_v33 = vadd.f32 1.0, %v1505_v24 }
 0x46e   :  { %v2442_v39 = vpop.xlane.xlu0 %619  ;;  %v704_v53 = vmul.f32 0.5, %v688_v33 }
 0x46f   :  { %805 = vperm.xlu1 %1494, %v783_v7  }
 0x470   :  { %v2444_v26 = vpop.xlane.xlu2 %617  ;;  %v784_v8 = vmul.f32 %v2217_v51, %v704_v53 }
 0x476   :  { %v624_v59 = vpop.xlane.xlu0 %623 }
 0x477   :  { %v647_v36 = vadd.f32 %v2429_v35, %v624_v59  ;;  %810 = vperm.xlu1 %1494, %v784_v8  }
 0x478   :  { %v622_v2 = vpop.xlane.xlu2 %621 }
 0x479   :  { %v663_v34 = vmul.f32 0.5, %v647_v36  ;;  %v646_v6 = vadd.f32 %v2429_v35, %v622_v2  ;;  %v642_v2 = vadd.f32 %v2429_v35, %v614_v62 }
 0x47b   :  { %1506 = vtanh.f32 %v663_v34  ;;  %v662_v38 = vmul.f32 0.5, %v646_v6 }
 0x47d   :  { %1508 = vtanh.f32 %v662_v38 }
 0x481   :  { %v1507_v61 = vpop.eup %1506 }
 0x482   :  { %v695_v42 = vadd.f32 1.0, %v1507_v61 }
 0x483   :  { %v1509_v21 = vpop.eup %1508 }
 0x484   :  { %v711_v22 = vmul.f32 0.5, %v695_v42  ;;  %v694_v18 = vadd.f32 1.0, %v1509_v21 }
 0x486   :  { %v710_v32 = vmul.f32 0.5, %v694_v18  ;;  %v626_v57 = vpop.xlane.xlu1 %625  ;;  %v791_v51 = vmul.f32 %v2154_v60, %v711_v22  ;;  %v658_v22 = vmul.f32 0.5, %v642_v2 }
 0x487   :  { %v648_v52 = vadd.f32 %v2429_v35, %v626_v57 }
 0x488   :  { %845 = vperm.xlu1 %1494, %v791_v51   ;;  %v790_v40 = vmul.f32 %v2222_v4, %v710_v32  ;;  %v1545_v51 = vld [vmem:[#allocation2 + $0x30] sm:$0xff] }
 0x489   :  { %v664_v5 = vmul.f32 0.5, %v648_v52  ;;  %vm996_vm9 = vcmp.gt.f32.partialorder %v1545_v51, 0.0 }
 0x48a   :  { %840 = vperm.xlu2 %1493, %v790_v40  }
 0x48b   :  { %1510 = vtanh.f32 %v664_v5  ;;  %v1012_v5 = vsel %vm996_vm9, 1, %v2598_v45 }
 0x48e   :  { %v628_v44 = vpop.xlane.xlu2 %627 }
 0x48f   :  { %v649_v0 = vadd.f32 %v2429_v35, %v628_v44  ;;  %v2600_v44 = vmov 64  }
 0x491   :  { %v1511_v1 = vpop.eup %1510  ;;  %v665_v20 = vmul.f32 0.5, %v649_v0 }
 0x492   :  { %v696_v24 = vadd.f32 1.0, %v1511_v1 }
 0x493   :  { %1512 = vtanh.f32 %v665_v20 }
 0x494   :  { %v712_v33 = vmul.f32 0.5, %v696_v24 }
 0x496   :  { %v630_v7 = vpop.xlane.xlu2 %629  ;;  %v792_v53 = vmul.f32 %v2128_v17, %v712_v33 }
 0x497   :  { %v650_v60 = vadd.f32 %v2429_v35, %v630_v7 }
 0x498   :  { %850 = vperm.xlu1 %1494, %v792_v53  }
 0x499   :  { %v1513_v8 = vpop.eup %1512  ;;  %v666_v59 = vmul.f32 0.5, %v650_v60  ;;  %v1546_v60 = vld [vmem:[#allocation2 + $0x38] sm:$0xff] }
 0x49a   :  { %v697_v4 = vadd.f32 1.0, %v1513_v8  ;;  %vm997_vm10 = vcmp.gt.f32.partialorder %v1546_v60, 0.0 }
 0x49b   :  { %1514 = vtanh.f32 %v666_v59 }
 0x49c   :  { %v713_v36 = vmul.f32 0.5, %v697_v4 }
 0x49e   :  { %v636_v34 = vpop.xlane.xlu2 %635  ;;  %v793_v6 = vmul.f32 %v2166_v10, %v713_v36  ;;  %v632_v61 = vpop.xlane.xlu0 %631  ;;  %v645_v10 = vadd.f32 %v2429_v35, %v2442_v39  ;;  %v1013_v36 = vsel %vm997_vm10, 1, %v2598_v45 }
 0x49f   :  { %v653_v38 = vadd.f32 %v2429_v35, %v636_v34  ;;  %v1039_v42 = vpop.permute.xlu1 %1038  ;;  %v651_v21 = vadd.f32 %v2429_v35, %v632_v61 }
 0x4a0   :  { %855 = vperm.xlu2 %1493, %v793_v6   ;;  %vm1075_vm8 = vcmp.eq.s32.totalorder %v1039_v42, 1  ;;  %v661_v1 = vmul.f32 0.5, %v645_v10 }
 0x4a1   :  { %v1515_v17 = vpop.eup %1514  ;;  %v669_v18 = vmul.f32 0.5, %v653_v38  ;;  %v667_v57 = vmul.f32 0.5, %v651_v21  ;;  %v1091_v52 = vsel %vm1075_vm8, %v2335_v37, -3e+38 }
 0x4a2   :  { %v698_v32 = vadd.f32 1.0, %v1515_v17  ;;  %v1132_v20 = vrot.slane %v1091_v52, 4 }
 0x4a3   :  { %1516 = vtanh.f32 %v669_v18 }
 0x4a4   :  { %v714_v62 = vmul.f32 0.5, %v698_v32  ;;  %1518 = vtanh.f32 %v667_v57  ;;  %v1133_v8 = vmax.f32 %v1091_v52, %v1132_v20 }
 0x4a5   :  { %1520 = vtanh.f32 %v658_v22 }
 0x4a6   :  { %v794_v40 = vmul.f32 %v2180_v48, %v714_v62  ;;  %1522 = vtanh.f32 %v661_v1  ;;  %v1134_v34 = vrot.slane %v1133_v8, 2 }
 0x4a8   :  { %860 = vperm.xlu0 %1495, %v794_v40   ;;  %1496 = vset.pattern.permute.xlu2 %v2600_v44  ;;  %v1135_v17 = vmax.f32 %v1133_v8, %v1134_v34 }
 0x4a9   :  { %v1517_v0 = vpop.eup %1516  ;;  %1041 = vperm.xlu2 %1496, %v1012_v5  }
 0x4aa   :  { %v1519_v24 = vpop.eup %1518  ;;  %v701_v33 = vadd.f32 1.0, %v1517_v0  ;;  %v1136_v45 = vrot.slane %v1135_v17, 1 }
 0x4ab   :  { %v1521_v7 = vpop.eup %1520  ;;  %v699_v53 = vadd.f32 1.0, %v1519_v24 }
 0x4ac   :  { %v717_v39 = vmul.f32 0.5, %v701_v33  ;;  %v690_v48 = vadd.f32 1.0, %v1521_v7  ;;  %v1523_v61 = vpop.eup %1522  ;;  %v1137_v62 = vmax.f32 %v1135_v17, %v1136_v45  ;;  %v131_v45 = vld [vmem:[#allocation7 + $0x110] sm:$0xff] }
 0x4ad   :  { %v715_v59 = vmul.f32 0.5, %v699_v53  ;;  %v693_v22 = vadd.f32 1.0, %v1523_v61  ;;  %v144_v53 = vld [vmem:[#allocation7 + $0x178] sm:$0xff] }
 0x4ae   :  { %v797_v4 = vmul.f32 %v2146_v23, %v717_v39  ;;  %v706_v38 = vmul.f32 0.5, %v690_v48  ;;  %v1203_v5 = vmax.f32 %v1137_v62, 0.0  ;;  %1448 = vmatpush.msrb.mxu2 %v144_v53  ;;  %1288 = vmatpush.msrb.mxu0 %v144_v53  ;;  %v140_v61 = vld [vmem:[#allocation7 + $0x158] sm:$0xff] }
 0x4af   :  { %v795_v2 = vmul.f32 %v2136_v19, %v715_v59  ;;  %v709_v19 = vmul.f32 0.5, %v693_v22  ;;  %v142_v59 = vld [vmem:[#allocation7 + $0x168] sm:$0xff] }
 0x4b0   :  { %875 = vperm.xlu0 %1495, %v797_v4   ;;  %v786_v23 = vmul.f32 %v2171_v43, %v706_v38  ;;  %v643_v43 = vadd.f32 %v2429_v35, %v2438_v27  ;;  %v141_v38 = vld [vmem:[#allocation7 + $0x160] sm:$0xff] }
 0x4b1   :  { %865 = vperm.xlu1 %1494, %v795_v2   ;;  %1044 = vperm.xlu2 %1496, %v1013_v36   ;;  %v1036_v6 = vpop.permute.xlu0 %1035  ;;  %v789_v52 = vmul.f32 %v2246_v13, %v709_v19  ;;  %v644_v13 = vadd.f32 %v2429_v35, %v2444_v26 }
 0x4b2   :  { %vm1074_vm11 = vcmp.eq.s32.totalorder %v1036_v6, 1  ;;  %v659_v33 = vmul.f32 0.5, %v643_v43 }
 0x4b3   :  { %v1090_v42 = vsel %vm1074_vm11, %v2324_v50, -3e+38  ;;  %v660_v60 = vmul.f32 0.5, %v644_v13 }
 0x4b4   :  { %v1126_v21 = vrot.slane %v1090_v42, 4 }
 0x4b6   :  { %v1127_v18 = vmax.f32 %v1090_v42, %v1126_v21  ;;  %v138_v42 = vld [vmem:[#allocation7 + $0x148] sm:$0xff]  ;;  %v137_v21 = vld [vmem:[#allocation7 + $0x140] sm:$0xff] }
 0x4b8   :  { %v1128_v32 = vrot.slane %v1127_v18, 2  ;;  %820 = vperm.xlu0 %1495, %v786_v23   ;;  %v133_v23 = vld [vmem:[#allocation7 + $0x120] sm:$0xff] }
 0x4ba   :  { %v1129_v57 = vmax.f32 %v1127_v18, %v1128_v32  ;;  %v134_v18 = vld [vmem:[#allocation7 + $0x128] sm:$0xff]  ;;  %v132_v32 = vld [vmem:[#allocation7 + $0x118] sm:$0xff] }
 0x4bc   :  { %v1130_v51 = vrot.slane %v1129_v57, 1 }
 0x4bd   :  { %v801_v17 = vpop.permute.xlu2 %800 }
 0x4be   :  { %v1131_v10 = vmax.f32 %v1129_v57, %v1130_v51 }
 0x4c0   :  { %v1202_v40 = vmax.f32 %v1131_v10, 0.0  ;;  %835 = vperm.xlu0 %1495, %v789_v52  }
 0x4c2   :  { %v1272_v0 = vsel %vm1236_vm13, %v1202_v40, %v2327_v11 }
 0x4c3   :  { %v2474_v1 = vsel %vm1238_vm0, %v1203_v5, %v1272_v0 }
 0x4c6   :  { %v816_v19 = vpop.permute.xlu2 %815 }
 0x4c8   :  { %1497 = vset.pattern.permute.xlu0 %v2600_v44  ;;  %v143_v44 = vld [vmem:[#allocation7 + $0x170] sm:$0xff] }
 0x4c9   :  { %v634_v20 = vpop.xlane.xlu1 %633  ;;  %1449 = vmatpush.msrb.mxu2 %v143_v44  ;;  %1289 = vmatpush.msrb.mxu0 %v143_v44  ;;  %v878_v44 = vmul.f32 %v801_v17, %v2291_v29 }
 0x4ca   :  { %v652_v24 = vadd.f32 %v2429_v35, %v634_v20  ;;  %v130_v20 = vld [vmem:[#allocation7 + $0x108] sm:$0xff] }
 0x4cb   :  { %1450 = vmatpush.msrb.mxu2 %v142_v59  ;;  %1290 = vmatpush.msrb.mxu0 %v142_v59 }
 0x4cc   :  { %v668_v7 = vmul.f32 0.5, %v652_v24 }
 0x4cd   :  { %1451 = vmatpush.msrb.mxu2 %v141_v38  ;;  %1291 = vmatpush.msrb.mxu0 %v141_v38 }
 0x4ce   :  { %1524 = vtanh.f32 %v668_v7 }
 0x4cf   :  { %1526 = vtanh.f32 %v659_v33  ;;  %1452 = vmatpush.msrb.mxu2 %v140_v61  ;;  %1292 = vmatpush.msrb.mxu0 %v140_v61  ;;  %v881_v61 = vmul.f32 %v816_v19, %v2308_v16 }
 0x4d0   :  { %1528 = vtanh.f32 %v660_v60 }
 0x4d1   :  { %v912_v16 = vrot.slane %v881_v61, 4 }
 0x4d4   :  { %v1525_v11 = vpop.eup %1524 }
 0x4d5   :  { %v700_v39 = vadd.f32 1.0, %v1525_v11  ;;  %v1527_v8 = vpop.eup %1526 }
 0x4d6   :  { %v691_v48 = vadd.f32 1.0, %v1527_v8  ;;  %v1529_v26 = vpop.eup %1528 }
 0x4d7   :  { %v716_v27 = vmul.f32 0.5, %v700_v39  ;;  %v692_v36 = vadd.f32 1.0, %v1529_v26  ;;  %v129_v39 = vld [vmem:[#allocation7 + $0x100] sm:$0xff] }
 0x4d8   :  { %v707_v35 = vmul.f32 0.5, %v691_v48 }
 0x4d9   :  { %v796_v4 = vmul.f32 %v2191_v31, %v716_v27  ;;  %v708_v34 = vmul.f32 0.5, %v692_v36  ;;  %v139_v31 = vld [vmem:[#allocation7 + $0x150] sm:$0xff] }
 0x4da   :  { %v787_v2 = vmul.f32 %v2233_v3, %v707_v35  ;;  %1453 = vmatpush.msrb.mxu2 %v139_v31  ;;  %1293 = vmatpush.msrb.mxu0 %v139_v31  ;;  %v136_v3 = vld [vmem:[#allocation7 + $0x138] sm:$0xff] }
 0x4db   :  { %870 = vperm.xlu1 %1494, %v796_v4   ;;  %v788_v6 = vmul.f32 %v2185_v58, %v708_v34  ;;  %v135_v58 = vld [vmem:[#allocation7 + $0x130] sm:$0xff] }
 0x4dc   :  { %1454 = vmatpush.msrb.mxu2 %v138_v42  ;;  %1294 = vmatpush.msrb.mxu0 %v138_v42 }
 0x4de   :  { %1455 = vmatpush.msrb.mxu2 %v137_v21  ;;  %1295 = vmatpush.msrb.mxu0 %v137_v21 }
 0x4e0   :  { %1456 = vmatpush.msrb.mxu2 %v136_v3  ;;  %1296 = vmatpush.msrb.mxu0 %v136_v3 }
 0x4e1   :  { %v806_v22 = vpop.permute.xlu1 %805 }
 0x4e2   :  { %1457 = vmatpush.msrb.mxu2 %v135_v58  ;;  %1297 = vmatpush.msrb.mxu0 %v135_v58  ;;  %v879_v31 = vmul.f32 %v806_v22, %v2303_v14 }
 0x4e3   :  { %825 = vperm.xlu1 %1494, %v787_v2   ;;  %v894_v2 = vrot.slane %v878_v44, 4 }
 0x4e4   :  { %1458 = vmatpush.msrb.mxu2 %v134_v18  ;;  %1298 = vmatpush.msrb.mxu0 %v134_v18  ;;  %v841_v51 = vpop.permute.xlu2 %840  ;;  %v160_v18 = vld [vmem:[#allocation7 + $0x1f8] sm:$0xff]  ;;  %v900_v19 = vrot.slane %v879_v31, 4 }
 0x4e5   :  { %v886_v43 = vmul.f32 %v841_v51, %v2359_v56  ;;  %1464 = vmatpush.msrb.mxu3 %v160_v18  ;;  %1314 = vmatpush.msrb.mxu1 %v160_v18 }
 0x4e6   :  { %1459 = vmatpush.msrb.mxu2 %v133_v23  ;;  %1299 = vmatpush.msrb.mxu0 %v133_v23 }
 0x4e7   :  { %v942_v11 = vrot.slane %v886_v43, 4 }
 0x4e8   :  { %1460 = vmatpush.msrb.mxu2 %v132_v32  ;;  %1300 = vmatpush.msrb.mxu0 %v132_v32 }
 0x4e9   :  { %v811_v57 = vpop.permute.xlu1 %810  ;;  %v943_v59 = vadd.f32 %v942_v11, %v886_v43 }
 0x4ea   :  { %1461 = vmatpush.msrb.mxu2 %v131_v45  ;;  %1301 = vmatpush.msrb.mxu0 %v131_v45  ;;  %v880_v21 = vmul.f32 %v811_v57, %v2279_v41 }
 0x4eb   :  { %830 = vperm.xlu1 %1494, %v788_v6   ;;  %v944_v34 = vrot.slane %v943_v59, 2 }
 0x4ec   :  { %1462 = vmatpush.msrb.mxu2 %v130_v20  ;;  %1302 = vmatpush.msrb.mxu0 %v130_v20  ;;  %v906_v22 = vrot.slane %v880_v21, 4 }
 0x4ed   :  { %v945_v17 = vadd.f32 %v944_v34, %v943_v59 }
 0x4ee   :  { %1463 = vmatpush.msrb.mxu2 %v129_v39  ;;  %1303 = vmatpush.msrb.mxu0 %v129_v39 }
 0x4fa   :  { %v846_v62 = vpop.permute.xlu1 %845  ;;  %v856_v52 = vpop.permute.xlu2 %855 }
 0x4fb   :  { %v887_v5 = vmul.f32 %v846_v62, %v2339_v28  ;;  %v889_v8 = vmul.f32 %v856_v52, %v2384_v25 }
 0x4fd   :  { %v948_v24 = vrot.slane %v887_v5, 4  ;;  %v960_v48 = vrot.slane %v889_v8, 4 }
 0x4ff   :  { %v961_v6 = vadd.f32 %v960_v48, %v889_v8  ;;  %v907_v8 = vadd.f32 %v906_v22, %v880_v21 }
 0x501   :  { %v962_v23 = vrot.slane %v961_v6, 2 }
 0x503   :  { %v1042_v60 = vpop.permute.xlu2 %1041  ;;  %v963_v43 = vadd.f32 %v962_v23, %v961_v6  ;;  %v908_v6 = vrot.slane %v907_v8, 2  ;;  %v154_v23 = vld [vmem:[#allocation7 + $0x1c8] sm:$0xff] }
 0x504   :  { %vm1076_vm12 = vcmp.eq.s32.totalorder %v1042_v60, 1 }
 0x505   :  { %v1092_v51 = vsel %vm1076_vm12, %v2347_v30, -3e+38  ;;  %v964_v48 = vrot.slane %v963_v43, 1  ;;  %v909_v22 = vadd.f32 %v908_v6, %v907_v8  ;;  %v148_v6 = vld [vmem:[#allocation7 + $0x198] sm:$0xff] }
 0x506   :  { %v1138_v11 = vrot.slane %v1092_v51, 4 }
 0x508   :  { %v1139_v34 = vmax.f32 %v1092_v51, %v1138_v11 }
 0x50a   :  { %v851_v40 = vpop.permute.xlu1 %850 }
 0x50b   :  { %v888_v0 = vmul.f32 %v851_v40, %v2375_v9  ;;  %v949_v9 = vadd.f32 %v948_v24, %v887_v5  ;;  %v1045_v29 = vpop.permute.xlu2 %1044 }
 0x50c   :  { %vm1077_vm14 = vcmp.eq.s32.totalorder %v1045_v29, 1 }
 0x50d   :  { %v954_v13 = vrot.slane %v888_v0, 4  ;;  %v1093_v52 = vsel %vm1077_vm14, %v2351_v54, -3e+38 }
 0x50f   :  { %v955_v56 = vadd.f32 %v954_v13, %v888_v0  ;;  %v901_v13 = vadd.f32 %v900_v19, %v879_v31 }
 0x511   :  { %v956_v26 = vrot.slane %v955_v56, 2 }
 0x513   :  { %v957_v3 = vadd.f32 %v956_v26, %v955_v56  ;;  %v157_v56 = vld [vmem:[#allocation7 + $0x1e0] sm:$0xff]  ;;  %v156_v26 = vld [vmem:[#allocation7 + $0x1d8] sm:$0xff] }
 0x515   :  { %v958_v41 = vrot.slane %v957_v3, 1 }
 0x51a   :  { %v861_v10 = vpop.permute.xlu0 %860 }
 0x51b   :  { %v890_v53 = vmul.f32 %v861_v10, %v2369_v63  ;;  %v950_v63 = vrot.slane %v949_v9, 2  ;;  %v946_v10 = vrot.slane %v945_v17, 1 }
 0x51d   :  { %v966_v27 = vrot.slane %v890_v53, 4  ;;  %v951_v42 = vadd.f32 %v950_v63, %v949_v9  ;;  %v1144_v9 = vrot.slane %v1093_v52, 4 }
 0x51f   :  { %v967_v36 = vadd.f32 %v966_v27, %v890_v53  ;;  %v952_v14 = vrot.slane %v951_v42, 1  ;;  %v947_v27 = vadd.f32 %v946_v10, %v945_v17 }
 0x521   :  { %v968_v58 = vrot.slane %v967_v36, 2  ;;  %v953_v53 = vadd.f32 %v952_v14, %v951_v42  ;;  %v155_v42 = vld [vmem:[#allocation7 + $0x1d0] sm:$0xff] }
 0x522   :  { %v876_v7 = vpop.permute.xlu0 %875 }
 0x523   :  { %v866_v33 = vpop.permute.xlu1 %865  ;;  %v893_v35 = vmul.f32 %v876_v7, %v2393_v55  ;;  %v2496_v55 = vadd.f32 %v894_v2, %v878_v44  ;;  %v969_v57 = vadd.f32 %v968_v58, %v967_v36  ;;  %v158_v7 = vld [vmem:[#allocation7 + $0x1e8] sm:$0xff]  ;;  %v902_v36 = vrot.slane %v901_v13, 2 }
 0x524   :  { %v891_v28 = vmul.f32 %v866_v33, %v2401_v15  ;;  %v159_v33 = vld [vmem:[#allocation7 + $0x1f0] sm:$0xff]  ;;  %v1244_v2 = vsel %vm1230_vm2, %v953_v53, %v947_v27 }
 0x525   :  { %v984_v38 = vrot.slane %v893_v35, 4  ;;  %v896_v0 = vrot.slane %v2496_v55, 2  ;;  %1465 = vmatpush.msrb.mxu3 %v159_v33  ;;  %1315 = vmatpush.msrb.mxu1 %v159_v33  ;;  %v903_v14 = vadd.f32 %v902_v36, %v901_v13 }
 0x526   :  { %v972_v4 = vrot.slane %v891_v28, 4 }
 0x527   :  { %v985_v45 = vadd.f32 %v984_v38, %v893_v35  ;;  %1466 = vmatpush.msrb.mxu3 %v158_v7  ;;  %1316 = vmatpush.msrb.mxu1 %v158_v7  ;;  %v1145_v38 = vmax.f32 %v1093_v52, %v1144_v9  ;;  %v904_v7 = vrot.slane %v903_v14, 1 }
 0x528   :  { %v973_v15 = vadd.f32 %v972_v4, %v891_v28  ;;  %v959_v28 = vadd.f32 %v958_v41, %v957_v3 }
 0x529   :  { %v986_v24 = vrot.slane %v985_v45, 2  ;;  %1467 = vmatpush.msrb.mxu3 %v157_v56  ;;  %1317 = vmatpush.msrb.mxu1 %v157_v56  ;;  %v1146_v51 = vrot.slane %v1145_v38, 2 }
 0x52a   :  { %v821_v25 = vpop.permute.xlu0 %820  ;;  %v974_v32 = vrot.slane %v973_v15, 2 }
 0x52b   :  { %v882_v40 = vmul.f32 %v821_v25, %v2324_v50  ;;  %v970_v50 = vrot.slane %v969_v57, 1  ;;  %v987_v35 = vadd.f32 %v986_v24, %v985_v45  ;;  %1468 = vmatpush.msrb.mxu3 %v156_v26  ;;  %1318 = vmatpush.msrb.mxu1 %v156_v26  ;;  %v1140_v45 = vrot.slane %v1139_v34, 2 }
 0x52c   :  { %v975_v20 = vadd.f32 %v974_v32, %v973_v15  ;;  %v1245_v15 = vsel %vm1232_vm4, %v959_v28, %v1244_v2  ;;  %v897_v32 = vadd.f32 %v896_v0, %v2496_v55  ;;  %v1147_v13 = vmax.f32 %v1145_v38, %v1146_v51 }
 0x52d   :  { %v918_v44 = vrot.slane %v882_v40, 4  ;;  %v988_v17 = vrot.slane %v987_v35, 1  ;;  %1469 = vmatpush.msrb.mxu3 %v155_v42  ;;  %1319 = vmatpush.msrb.mxu1 %v155_v42  ;;  %v147_v42 = vld [vmem:[#allocation7 + $0x190] sm:$0xff] }
 0x52e   :  { %v976_v4 = vrot.slane %v975_v20, 1 }
 0x52f   :  { %v919_v29 = vadd.f32 %v918_v44, %v882_v40  ;;  %1470 = vmatpush.msrb.mxu3 %v154_v23  ;;  %1320 = vmatpush.msrb.mxu1 %v154_v23  ;;  %v989_v40 = vadd.f32 %v988_v17, %v987_v35  ;;  %v905_v35 = vadd.f32 %v904_v7, %v903_v14 }
 0x530   :  { %v977_v58 = vadd.f32 %v976_v4, %v975_v20  ;;  %v1141_v20 = vmax.f32 %v1139_v34, %v1140_v45 }
 0x532   :  { %v836_v60 = vpop.permute.xlu0 %835 }
 0x533   :  { %v885_v63 = vmul.f32 %v836_v60, %v2351_v54  ;;  %v965_v54 = vadd.f32 %v964_v48, %v963_v43  ;;  %v152_v43 = vld [vmem:[#allocation7 + $0x1b8] sm:$0xff]  ;;  %v151_v60 = vld [vmem:[#allocation7 + $0x1b0] sm:$0xff]  ;;  %v1142_v48 = vrot.slane %v1141_v20, 1 }
 0x535   :  { %v936_v18 = vrot.slane %v885_v63, 4  ;;  %v1246_v41 = vsel %vm1234_vm5, %v965_v54, %v1245_v15  ;;  %v1143_v15 = vmax.f32 %v1141_v20, %v1142_v48 }
 0x537   :  { %v1204_v23 = vmax.f32 %v1143_v15, 0.0 }
 0x54d   :  { %v871_v62 = vpop.permute.xlu1 %870 }
 0x54e   :  { %v892_v5 = vmul.f32 %v871_v62, %v2414_v12  ;;  %v2503_v12 = vadd.f32 %v912_v16, %v881_v61  ;;  %v971_v61 = vadd.f32 %v970_v50, %v969_v57  ;;  %v920_v57 = vrot.slane %v919_v29, 2 }
 0x54f   :  { %v898_v50 = vrot.slane %v897_v32, 1 }
 0x550   :  { %v978_v39 = vrot.slane %v892_v5, 4  ;;  %v1247_v52 = vsel %vm1236_vm13, %v971_v61, %v1246_v41  ;;  %v914_v55 = vrot.slane %v2503_v12, 2  ;;  %v921_v8 = vadd.f32 %v920_v57, %v919_v29 }
 0x551   :  { %v1248_v0 = vsel %vm1238_vm0, %v977_v58, %v1247_v52  ;;  %v145_v52 = vld [vmem:[#allocation7 + $0x180] sm:$0xff] }
 0x552   :  { %v979_v59 = vadd.f32 %v978_v39, %v892_v5  ;;  %v937_v5 = vadd.f32 %v936_v18, %v885_v63  ;;  %v910_v39 = vrot.slane %v909_v22, 1  ;;  %v915_v56 = vadd.f32 %v914_v55, %v2503_v12  ;;  %v146_v18 = vld [vmem:[#allocation7 + $0x188] sm:$0xff] }
 0x553   :  { %v1148_v63 = vrot.slane %v1147_v13, 1  ;;  %v922_v36 = vrot.slane %v921_v8, 1  ;;  %v1287_v55 = vperm.slane %v2426_v46, 2 }
 0x554   :  { %v980_v25 = vrot.slane %v979_v59, 2  ;;  %v938_v27 = vrot.slane %v937_v5, 2  ;;  %v911_v26 = vadd.f32 %v910_v39, %v909_v22  ;;  %v916_v34 = vrot.slane %v915_v56, 1 }
 0x555   :  { %v826_v31 = vpop.permute.xlu1 %825 }
 0x556   :  { %v981_v21 = vadd.f32 %v980_v25, %v979_v59  ;;  %v883_v3 = vmul.f32 %v826_v31, %v2335_v37  ;;  %v153_v37 = vld [vmem:[#allocation7 + $0x1c0] sm:$0xff]  ;;  %v150_v59 = vld [vmem:[#allocation7 + $0x1a8] sm:$0xff]  ;;  %v939_v25 = vadd.f32 %v938_v27, %v937_v5  ;;  %v1149_v31 = vmax.f32 %v1147_v13, %v1148_v63 }
 0x557   :  { %1471 = vmatpush.msrb.mxu3 %v153_v37  ;;  %1321 = vmatpush.msrb.mxu1 %v153_v37  ;;  %v917_v54 = vadd.f32 %v916_v34, %v915_v56  ;;  %v1274_v37 = vsel %vm1240_vm6, %v1204_v23, %v2474_v1 }
 0x558   :  { %v982_v16 = vrot.slane %v981_v21, 1  ;;  %v924_v19 = vrot.slane %v883_v3, 4  ;;  %v940_v58 = vrot.slane %v939_v25, 1  ;;  %v1205_v45 = vmax.f32 %v1149_v31, 0.0 }
 0x559   :  { %1472 = vmatpush.msrb.mxu3 %v152_v43  ;;  %1322 = vmatpush.msrb.mxu1 %v152_v43 }
 0x55a   :  { %v983_v62 = vadd.f32 %v982_v16, %v981_v21  ;;  %v925_v10 = vadd.f32 %v924_v19, %v883_v3  ;;  %v923_v21 = vadd.f32 %v922_v36, %v921_v8  ;;  %v941_v22 = vadd.f32 %v940_v58, %v939_v25 }
 0x55b   :  { %1473 = vmatpush.msrb.mxu3 %v151_v60  ;;  %1323 = vmatpush.msrb.mxu1 %v151_v60 }
 0x55c   :  { %v926_v24 = vrot.slane %v925_v10, 2  ;;  %v1249_v33 = vsel %vm1240_vm6, %v983_v62, %v1248_v0  ;;  %v1275_v62 = vsel %vm1242_vm7, %v1205_v45, %v1274_v37 }
 0x55d   :  { %v831_v53 = vpop.permute.xlu1 %830  ;;  %v1250_v11 = vsel %vm1242_vm7, %v989_v40, %v1249_v33  ;;  %1474 = vmatpush.msrb.mxu3 %v150_v59  ;;  %1324 = vmatpush.msrb.mxu1 %v150_v59 }
 0x55e   :  { %v884_v28 = vmul.f32 %v831_v53, %v2347_v30  ;;  %v1286_v9 = vsel %vm441_vm1, %v1250_v11, %v2423_v47  ;;  %v927_v44 = vadd.f32 %v926_v24, %v925_v10  ;;  %v149_v30 = vld [vmem:[#allocation7 + $0x1a0] sm:$0xff]  ;;  %v899_v47 = vadd.f32 %v898_v50, %v897_v32 }
 0x55f   :  { %1307 = vmatmul.f32.vlgmr.msrb.gmra.mxu2 %v1286_v9  ;;  %1475 = vmatpush.msrb.mxu3 %v149_v30  ;;  %v1313_v24 = vperm.slane %v2426_v46, 3 }
 0x560   :  { %v930_v4 = vrot.slane %v884_v28, 4  ;;  %v928_v12 = vrot.slane %v927_v44, 1  ;;  %1325 = vmatpush.msrb.mxu1 %v149_v30  ;;  %v1231_v61 = vsel %vm1230_vm2, %v905_v35, %v899_v47  ;;  %vm1337_vm2 = vcmp.lt.s32.totalorder %v1823_v49, 3 }
 0x561   :  { %v1233_v29 = vsel %vm1232_vm4, %v911_v26, %v1231_v61  ;;  %1476 = vmatpush.msrb.mxu3 %v148_v6 }
 0x562   :  { %v931_v2 = vadd.f32 %v930_v4, %v884_v28  ;;  %1326 = vmatpush.msrb.mxu1 %v148_v6  ;;  %v929_v17 = vadd.f32 %v928_v12, %v927_v44  ;;  %v1235_v16 = vsel %vm1234_vm5, %v917_v54, %v1233_v29 }
 0x563   :  { %1477 = vmatpush.msrb.mxu3 %v147_v42  ;;  %v1237_v14 = vsel %vm1236_vm13, %v923_v21, %v1235_v16 }
 0x564   :  { %v932_v38 = vrot.slane %v931_v2, 2  ;;  %1327 = vmatpush.msrb.mxu1 %v147_v42  ;;  %v1239_v51 = vsel %vm1238_vm0, %v929_v17, %v1237_v14 }
 0x565   :  { %1478 = vmatpush.msrb.mxu3 %v146_v18 }
 0x566   :  { %v933_v3 = vadd.f32 %v932_v38, %v931_v2  ;;  %1328 = vmatpush.msrb.mxu1 %v146_v18 }
 0x567   :  { %1479 = vmatpush.msrb.mxu3 %v145_v52 }
 0x568   :  { %v934_v32 = vrot.slane %v933_v3, 1  ;;  %1329 = vmatpush.msrb.mxu1 %v145_v52 }
 0x56a   :  { %v935_v19 = vadd.f32 %v934_v32, %v933_v3 }
 0x56c   :  { %v1241_v41 = vsel %vm1240_vm6, %v935_v19, %v1239_v51 }
 0x56d   :  { %v1243_v57 = vsel %vm1242_vm7, %v941_v22, %v1241_v41 }
 0x56e   :  { %v1285_v10 = vsel %vm441_vm1, %v1243_v57, %v1275_v62 }
 0x56f   :  { %1304 = vmatmul.f32.vlgmr.msrb.gmra.mxu0 %v1285_v10 }
 0x5e2   :  { %v1308_v40 = vpop.f32.mrf.mxu2 }
 0x5e3   :  { %v1309_v5 = vadd.f32 %v1308_v40, %v1287_v55 }
 0x5e5   :  { %v1312_v0 = vmax.f32 %v1309_v5, 0.0 }
 0x5e7   :  { %1333 = vmatmul.f32.vlgmr.msrb.gmra.mxu3 %v1312_v0 }
 0x5ec   :  { %v1305_v43 = vpop.f32.mrf.mxu0 }
 0x5ed   :  { %v1306_v20 = vadd.f32 %v1305_v43, %v1287_v55 }
 0x5ef   :  { %v1311_v1 = vmax.f32 %v1306_v20, 0.0 }
 0x5f1   :  { %1330 = vmatmul.f32.vlgmr.msrb.gmra.mxu1 %v1311_v1 }
 0x66a   :  { %v1334_v33 = vpop.f32.mrf.mxu3 }
 0x66b   :  { %v1335_v7 = vadd.f32 %v1334_v33, %v1313_v24 }
 0x66d   :  { %v1341_v13 = vand.u32 2147483647, %v1335_v7  ;;  %1409 = vst [vmem:[#allocation9 + $0x8] sm:$0xff] %v1335_v7  ;;  %v1339_v36 = vmax.f32 %v1335_v7, 0.0 }
 0x66e   :  { %v1331_v53 = vpop.f32.mrf.mxu1 }
 0x66f   :  { %v1343_v11 = vsub.f32 0.0, %v1341_v13  ;;  %v1332_v60 = vadd.f32 %v1331_v53, %v1313_v24 }
 0x671   :  { %v1346_v39 = vmul.f32 1.442695, %v1343_v11  ;;  %v1340_v8 = vand.u32 2147483647, %v1332_v60  ;;  %1408 = vst [vmem:[#allocation9] sm:$0xff] %v1332_v60  ;;  %v1338_v38 = vmax.f32 %v1332_v60, 0.0 }
 0x672   :  { %1435 = dma.vmem_to_hbm [thread:$0]  %s1428_s5, 256, %s1430_s8, [#allocation10], %s1676_s23, %s1676_s23, %s1677_s24  }
 0x673   :  { %1530 = vpow2.f32 %v1346_v39  ;;  %v1342_v28 = vsub.f32 0.0, %v1340_v8 }
 0x675   :  { %v1344_v9 = vmul.f32 1.442695, %v1342_v28 }
 0x677   :  { %1532 = vpow2.f32 %v1344_v9 }
 0x679   :  { %v1531_v50 = vpop.eup %1530 }
 0x67a   :  { %v1357_v56 = vadd.f32 1.0, %v1531_v50  ;;  %v1360_v27 = vmul.f32 -0.5, %v1531_v50  ;;  %v1363_v4 = vand.u32 2147483647, %v1531_v50 }
 0x67c   :  { %1534 = vlog2.f32 %v1357_v56  ;;  %v1361_v59 = vadd.f32 1.0, %v1360_v27  ;;  %vm1364_vm1 = vcmp.lt.f32.partialorder %v1363_v4, 0.0004427343 }
 0x67d   :  { %v1533_v44 = vpop.eup %1532 }
 0x67e   :  { %v1348_v46 = vadd.f32 1.0, %v1533_v44  ;;  %v1351_v48 = vmul.f32 -0.5, %v1533_v44  ;;  %v1362_v30 = vmul.f32 %v1531_v50, %v1361_v59  ;;  %v1354_v2 = vand.u32 2147483647, %v1533_v44 }
 0x680   :  { %1536 = vlog2.f32 %v1348_v46  ;;  %v1352_v26 = vadd.f32 1.0, %v1351_v48  ;;  %vm1355_vm4 = vcmp.lt.f32.partialorder %v1354_v2, 0.0004427343 }
 0x682   :  { %v1535_v35 = vpop.eup %1534  ;;  %v1353_v6 = vmul.f32 %v1533_v44, %v1352_v26 }
 0x683   :  { %v1359_v63 = vmul.f32 0.6931472, %v1535_v35 }
 0x685   :  { %v1365_v47 = vsel %vm1364_vm1, %v1362_v30, %v1359_v63 }
 0x686   :  { %v1537_v34 = vpop.eup %1536  ;;  %v1367_v25 = vadd.f32 %v1365_v47, %v1339_v36 }
 0x687   :  { %v1350_v12 = vmul.f32 0.6931472, %v1537_v34 }
 0x688   :  { %v1369_v15 = vsel %vm1337_vm2, %v1367_v25, 0.0 }
 0x689   :  { %1372 = vadd.xlane.f32.xlu1 %v1369_v15  ;;  %v1356_v61 = vsel %vm1355_vm4, %v1353_v6, %v1350_v12 }
 0x68a   :  { %v1366_v31 = vadd.f32 %v1356_v61, %v1338_v38 }
 0x68c   :  { %v1368_v42 = vsel %vm1337_vm2, %v1366_v31, 0.0 }
 0x68d   :  { %1370 = vadd.xlane.f32.xlu2 %v1368_v42 }
 0x6fc   :  { %v1373_v29 = vpop.xlane.xlu1 %1372 }
 0x6fd   :  { %1538 = vrcp.f32 %v1373_v29  ;;  %v1398_v18 = vand.u32 2147483647, %v1373_v29  ;;  %v1400_v23 = vand.u32 2147483648, %v1373_v29  ;;  %vm1394_vm13 = vweird.f32 %v1373_v29 }
 0x6ff   :  { %vm1399_vm0 = vcmp.eq.f32.partialorder %v1398_v18, 8.507059e+37  ;;  %v1401_v14 = vor.u32 1.1754944e-38, %v1400_v23 }
 0x700   :  { %v1371_v21 = vpop.xlane.xlu2 %1370 }
 0x701   :  { %1540 = vrcp.f32 %v1371_v21  ;;  %v1385_v22 = vand.u32 2147483648, %v1371_v21  ;;  %v1383_v37 = vand.u32 2147483647, %v1371_v21  ;;  %vm1379_vm6 = vweird.f32 %v1371_v21 }
 0x703   :  { %v1539_v3 = vpop.eup %1538  ;;  %v1386_v52 = vor.u32 1.1754944e-38, %v1385_v22  ;;  %vm1384_vm8 = vcmp.eq.f32.partialorder %v1383_v37, 8.507059e+37 }
 0x704   :  { %v1390_v54 = vmul.f32 %v1539_v3, %v1373_v29  ;;  %vm1395_vm5 = vweird.f32 %v1539_v3 }
 0x705   :  { %vm1396_vm15 = vmor %vm1394_vm13, %vm1395_vm5 }
 0x706   :  { %v1391_v58 = vsub.f32 1.0, %v1390_v54 }
 0x707   :  { %v1541_v17 = vpop.eup %1540 }
 0x708   :  { %v1392_v32 = vmul.f32 %v1539_v3, %v1391_v58  ;;  %v1375_v45 = vmul.f32 %v1541_v17, %v1371_v21  ;;  %vm1380_vm3 = vweird.f32 %v1541_v17 }
 0x709   :  { %vm1381_vm7 = vmor %vm1379_vm6, %vm1380_vm3 }
 0x70a   :  { %v1393_v16 = vadd.f32 %v1539_v3, %v1392_v32  ;;  %v1376_v19 = vsub.f32 1.0, %v1375_v45 }
 0x70c   :  { %v1397_v51 = vsel %vm1396_vm15, %v1539_v3, %v1393_v16  ;;  %v1377_v41 = vmul.f32 %v1541_v17, %v1376_v19 }
 0x70d   :  { %v1402_v57 = vsel %vm1399_vm0, %v1401_v14, %v1397_v51 }
 0x70e   :  { %v1378_v62 = vadd.f32 %v1541_v17, %v1377_v41  ;;  %v1403_v10 = vmul.f32 %v1402_v57, %v1369_v15 }
 0x710   :  { %v1382_v55 = vsel %vm1381_vm7, %v1541_v17, %v1378_v62  ;;  %v1405_v40 = vsel %vm1337_vm2, %v1403_v10, 0.0 }
 0x711   :  { %v1387_v5 = vsel %vm1384_vm8, %v1386_v52, %v1382_v55  ;;  %1407 = vst [vmem:[#allocation8 + $0x8] sm:$0xff] %v1405_v40 }
 0x712   :  { %v1388_v0 = vmul.f32 %v1387_v5, %v1368_v42 }
 0x714   :  { %v1404_v43 = vsel %vm1337_vm2, %v1388_v0, 0.0 }
 0x715   :  { %1406 = vst [vmem:[#allocation8] sm:$0xff] %v1404_v43 }
 0x716   :  { %1422 = dma.vmem_to_hbm [thread:$0]  %s1415_s9, 256, %s1417_s12, [#allocation4], %s1676_s23, %s1676_s23, %s1677_s24  }
 0x717   :  { %1671 = dma.done.wait [#allocation4], 256  }
 0x718   :  { %1672 = vsyncadd [#allocation4], 4294967040 }
 0x719   :  { %1673 = dma.done.wait [#allocation10], 256  }
 0x71a   :  { %1674 = vsyncadd [#allocation10], 4294967040 }
 0x71b   :  { %1444 = vsyncpa [#allocation3], 1 }
 0x71c   :  { %1445 = vsyncpa [#allocation6], 1 }
 0x71d   :  { %1446 = vsyncpa [#allocation4], 1 }
 0x71e   :  { %1447 = vsyncpa [#allocation10], 1 }

</bundles_post_ra>
